<compile_context>
chip_gen: v7x
topology: tpu7x:2x2x1
jax: 0.10.0
libtpu: 0.0.40
codegen_flags: <defaults>
</compile_context>

<pallas_src>
import functools

import jax
import jax.numpy as jnp
from jax import lax
from jax.experimental import pallas as pl
from jax.experimental.pallas import tpu as pltpu

Z_MIN = 1e-4        # depth clamp, mirrors camera.z_min in EPro-PnP
GROUP = 8           # objects per grid step (fills the 8 sublanes of a vreg)
_CHOL_FLOOR = 1e-12  # pivot guard for the unrolled Cholesky


# ----------------------------------------------------------------------------
# Closed-form 4x4 SPD solve (unrolled Cholesky). Pure elementwise jnp, shared
# by the in-kernel solve (operands (G,1)) and the host-side GN step ((B,)).
# ----------------------------------------------------------------------------
def _chol_solve4(m, g):
    m00, m01, m02, m03, m11, m12, m13, m22, m23, m33 = m
    g0, g1, g2, g3 = g
    l00 = jnp.sqrt(jnp.maximum(m00, _CHOL_FLOOR))
    i00 = 1.0 / l00
    l10 = m01 * i00
    l20 = m02 * i00
    l30 = m03 * i00
    l11 = jnp.sqrt(jnp.maximum(m11 - l10 * l10, _CHOL_FLOOR))
    i11 = 1.0 / l11
    l21 = (m12 - l20 * l10) * i11
    l31 = (m13 - l30 * l10) * i11
    l22 = jnp.sqrt(jnp.maximum(m22 - l20 * l20 - l21 * l21, _CHOL_FLOOR))
    i22 = 1.0 / l22
    l32 = (m23 - l30 * l20 - l31 * l21) * i22
    l33 = jnp.sqrt(jnp.maximum(m33 - l30 * l30 - l31 * l31 - l32 * l32,
                               _CHOL_FLOOR))
    i33 = 1.0 / l33
    # forward: L y = g
    y0 = g0 * i00
    y1 = (g1 - l10 * y0) * i11
    y2 = (g2 - l20 * y0 - l21 * y1) * i22
    y3 = (g3 - l30 * y0 - l31 * y1 - l32 * y2) * i33
    # backward: L^T x = y
    x3 = y3 * i33
    x2 = (y2 - l32 * x3) * i22
    x1 = (y1 - l21 * x2 - l31 * x3) * i11
    x0 = (y0 - l10 * x1 - l20 * x2 - l30 * x3) * i00
    return x0, x1, x2, x3


# ----------------------------------------------------------------------------
# In-kernel evaluation: residual + Jacobian fused directly into
# (J^T J, J^T r, sum r^2) via lane reductions on sublane-dense (G, N) tiles.
# ----------------------------------------------------------------------------
def _evaluate(tx, ty, tz, yaw, pts_ref, fx, fy, cx, cy):
    # per-object scalars are (G, 1); point features are (G, N)
    sy = jnp.sin(yaw)
    cw = jnp.cos(yaw)

    X = pts_ref[0]
    Y = pts_ref[1]
    Z = pts_ref[2]
    u_t = pts_ref[3]
    v_t = pts_ref[4]
    wu = pts_ref[5]
    wv = pts_ref[6]

    # yaw rotation about the Y axis: R = [[c,0,s],[0,1,0],[-s,0,c]]
    xc = cw * X + sy * Z + tx
    yc = Y + ty
    zc_raw = cw * Z - sy * X + tz
    zc = jnp.maximum(zc_raw, Z_MIN)

    # EUP reciprocal + one Newton refinement (off the VPU divide path)
    inv_z = pl.reciprocal(zc, approx=True)
    inv_z = inv_z * (2.0 - zc * inv_z)
    inv_z2 = inv_z * inv_z

    u = fx * xc * inv_z + cx
    v = fy * yc * inv_z + cy
    ru = (u - u_t) * wu                    # weighted residuals
    rv = (v - v_t) * wv

    # where the depth clamp is active zc is constant, so the d(.)/d(zc) chain
    # is zeroed to keep residual and Jacobian consistent
    gate = jnp.where(zc_raw >= Z_MIN, 1.0, 0.0)
    du_dxc = fx * inv_z
    du_dzc = -(fx * xc) * inv_z2 * gate
    dv_dyc = fy * inv_z
    dv_dzc = -(fy * yc) * inv_z2 * gate
    dxc_dyaw = cw * Z - sy * X
    dzc_dyaw = -(cw * X + sy * Z)

    # TODO(synk): clip_jac and the Huber robustification live in the external
    # cost_fun/camera objects; a plain weighted squared reprojection cost is used.

    a0 = wu * du_dxc                                    # d ru / d x
    a2 = wu * du_dzc                                    # d ru / d z
    a3 = wu * (du_dxc * dxc_dyaw + du_dzc * dzc_dyaw)   # d ru / d yaw
    b1 = wv * dv_dyc                                    # d rv / d y
    b2 = wv * dv_dzc                                    # d rv / d z
    b3 = wv * (dv_dzc * dzc_dyaw)                       # d rv / d yaw

    def rsum(x):                                        # (G, N) -> (G, 1)
        return jnp.sum(x, axis=-1, keepdims=True)

    # JtJ is symmetric with j01 == 0 structurally (u-row has no y, v-row no x)
    j00 = rsum(a0 * a0)
    j02 = rsum(a0 * a2)
    j03 = rsum(a0 * a3)
    j11 = rsum(b1 * b1)
    j12 = rsum(b1 * b2)
    j13 = rsum(b1 * b3)
    j22 = rsum(a2 * a2 + b2 * b2)
    j23 = rsum(a2 * a3 + b2 * b3)
    j33 = rsum(a3 * a3 + b3 * b3)
    g0 = rsum(a0 * ru)
    g1 = rsum(b1 * rv)
    g2 = rsum(a2 * ru + b2 * rv)
    g3 = rsum(a3 * ru + b3 * rv)
    cost = rsum(ru * ru + rv * rv)
    return (j00, j02, j03, j11, j12, j13, j22, j23, j33,
            g0, g1, g2, g3, cost)


# ----------------------------------------------------------------------------
# Fused LM kernel: init eval -> num_iter trust-region iterations -> outputs.
# Carried JtJ/grad/cost always correspond to the currently accepted pose, so
# they are written out directly (no extra final evaluation needed).
# ----------------------------------------------------------------------------
def _lm_kernel(num_iter, min_lm_diag, max_lm_diag, min_rel_decrease,
               init_radius, max_radius, eps,
               pts_ref, pose_ref, cam_ref, pose_out_ref, eval_out_ref):
    cam = cam_ref[...]                       # (G, 4)
    fx = cam[:, 0:1]
    fy = cam[:, 1:2]
    cx = cam[:, 2:3]
    cy = cam[:, 3:4]

    p0 = pose_ref[...]                       # (G, 4)
    tx0 = p0[:, 0:1]
    ty0 = p0[:, 1:2]
    tz0 = p0[:, 2:3]
    yaw0 = p0[:, 3:4]

    ev0 = _evaluate(tx0, ty0, tz0, yaw0, pts_ref, fx, fy, cx, cy)
    radius0 = jnp.full_like(ev0[13], init_radius)
    decrease0 = jnp.full_like(ev0[13], 2.0)

    def body(_, carry):
        (tx, ty, tz, yaw,
         j00, j02, j03, j11, j12, j13, j22, j23, j33,
         g0, g1, g2, g3, cost, radius, decrease) = carry

        def damp(d):
            add = jnp.clip(d, min_lm_diag, max_lm_diag) / radius + eps
            return d + jnp.maximum(add, eps)

        zero = jnp.zeros_like(j00)
        s0, s1, s2, s3 = _chol_solve4(
            (damp(j00), zero, j02, j03, damp(j11), j12, j13,
             damp(j22), j23, damp(j33)),
            (g0, g1, g2, g3))
        s0, s1, s2, s3 = -s0, -s1, -s2, -s3

        ntx = tx + s0
        nty = ty + s1
        ntz = tz + s2
        nyaw = yaw + s3

        ev = _evaluate(ntx, nty, ntz, nyaw, pts_ref, fx, fy, cx, cy)
        ncost = ev[13]

        # model cost change uses the *undamped* JtJ (reference formula)
        r0 = j00 * s0 + j02 * s2 + j03 * s3
        r1 = j11 * s1 + j12 * s2 + j13 * s3
        r2 = j02 * s0 + j12 * s1 + j22 * s2 + j23 * s3
        r3 = j03 * s0 + j13 * s1 + j23 * s2 + j33 * s3
        mcc = -(s0 * (0.5 * r0 + g0) + s1 * (0.5 * r1 + g1)
                + s2 * (0.5 * r2 + g2) + s3 * (0.5 * r3 + g3))
        rd = (cost - ncost) / mcc
        ok = jnp.logical_and(rd >= min_rel_decrease, mcc > 0.0)   # (G,1) bool

        tx = jnp.where(ok, ntx, tx)
        ty = jnp.where(ok, nty, ty)
        tz = jnp.where(ok, ntz, tz)
        yaw = jnp.where(ok, nyaw, yaw)

        t = 2.0 * rd - 1.0
        radius_ok = radius / jnp.maximum(1.0 - t * t * t, 1.0 / 3.0)
        radius = jnp.where(ok, radius_ok, radius)
        radius = jnp.clip(radius, eps, max_radius)
        radius = jnp.where(ok, radius, radius / decrease)
        decrease = jnp.where(ok, 2.0, decrease * 2.0)

        cur = (j00, j02, j03, j11, j12, j13, j22, j23, j33,
               g0, g1, g2, g3, cost)
        new = [jnp.where(ok, n, c) for n, c in zip(ev, cur)]

        return (tx, ty, tz, yaw, *new, radius, decrease)

    carry = (tx0, ty0, tz0, yaw0, *ev0, radius0, decrease0)
    if num_iter > 0:
        # TODO(synk): for very large point counts the evaluation could chunk the
        # lane axis to bound vreg pressure; the compiler spills to VMEM otherwise.
        carry = lax.fori_loop(0, num_iter, body, carry)

    tx, ty, tz, yaw = carry[0], carry[1], carry[2], carry[3]
    pose_out_ref[:, 0:1] = tx
    pose_out_ref[:, 1:2] = ty
    pose_out_ref[:, 2:3] = tz
    pose_out_ref[:, 3:4] = yaw

    # packed final-pose evaluation: [j00,j02,j03,j11,j12,j13,j22,j23,j33,
    #                                g0,g1,g2,g3,cost, 0, 0]
    for k in range(14):
        eval_out_ref[:, k:k + 1] = carry[4 + k]
    eval_out_ref[:, 14:16] = jnp.zeros((tx.shape[0], 2), jnp.float32)


def _lm_pallas(pts, pose_init, cam, *, num_iter, min_lm_diag, max_lm_diag,
               min_rel_decrease, init_radius, max_radius, eps):
    _, bpad, npad = pts.shape
    group = GROUP
    grid = (bpad // group,)
    kernel = functools.partial(
        _lm_kernel, num_iter, min_lm_diag, max_lm_diag, min_rel_decrease,
        init_radius, max_radius, eps)
    grid_spec = pltpu.PrefetchScalarGridSpec(
        num_scalar_prefetch=0,
        grid=grid,
        in_specs=[
            pl.BlockSpec((8, group, npad), lambda b: (0, b, 0)),   # points
            pl.BlockSpec((group, 4), lambda b: (b, 0)),            # pose init
            pl.BlockSpec((group, 4), lambda b: (b, 0)),            # camera
        ],
        out_specs=[
            pl.BlockSpec((group, 4), lambda b: (b, 0)),            # pose_opt
            pl.BlockSpec((group, 16), lambda b: (b, 0)),           # jtj/grad/cost
        ],
    )
    return pl.pallas_call(
        kernel,
        out_shape=(jax.ShapeDtypeStruct((bpad, 4), jnp.float32),
                   jax.ShapeDtypeStruct((bpad, 16), jnp.float32)),
        grid_spec=grid_spec,
        compiler_params=pltpu.CompilerParams(
            dimension_semantics=("parallel",)),
    )(pts, pose_init, cam)


# ----------------------------------------------------------------------------
# Host-side packing / small helpers
# ----------------------------------------------------------------------------
def _pack_inputs(x3d, x2d, w2d, pose_init, cam):
    """Feature-major slab (8, Bpad, Npad): rows [X,Y,Z,u,v,wu,wv,0]; point axis
    lane-aligned (Npad % 128 == 0), object axis padded to a multiple of GROUP."""
    num_obj, num_pts, _ = x3d.shape
    feats = jnp.concatenate(
        [x3d.astype(jnp.float32), x2d.astype(jnp.float32),
         w2d.astype(jnp.float32),
         jnp.zeros((num_obj, num_pts, 1), jnp.float32)], axis=-1)   # (B, N, 8)
    npad = (-num_pts) % 128
    if npad:
        # zero weights => padded points contribute nothing to J, r, cost
        feats = jnp.pad(feats, ((0, 0), (0, npad), (0, 0)))
    bpad = (-num_obj) % GROUP
    pose_init = pose_init.astype(jnp.float32)
    cam = cam.astype(jnp.float32)
    if bpad:
        feats = jnp.pad(feats, ((0, bpad), (0, 0), (0, 0)))
        pose_pad = jnp.tile(jnp.array([[0.0, 0.0, 1.0, 0.0]], jnp.float32),
                            (bpad, 1))
        cam_pad = jnp.tile(jnp.array([[1.0, 1.0, 0.0, 0.0]], jnp.float32),
                           (bpad, 1))
        pose_init = jnp.concatenate([pose_init, pose_pad], axis=0)
        cam = jnp.concatenate([cam, cam_pad], axis=0)
    pts = jnp.transpose(feats, (2, 0, 1))                           # (8,Bpad,Npad)
    return pts, pose_init, cam


def _assemble_jtj(eval_out):
    j00, j02, j03, j11, j12, j13, j22, j23, j33 = [eval_out[:, k]
                                                   for k in range(9)]
    z = jnp.zeros_like(j00)
    rows = [jnp.stack([j00, z, j02, j03], axis=-1),
            jnp.stack([z, j11, j12, j13], axis=-1),
            jnp.stack([j02, j12, j22, j23], axis=-1),
            jnp.stack([j03, j13, j23, j33], axis=-1)]
    return jnp.stack(rows, axis=-2)


def _gn_step_from_eval(eval_out, eps):
    (j00, j02, j03, j11, j12, j13, j22, j23, j33,
     g0, g1, g2, g3) = [eval_out[:, k] for k in range(13)]
    zero = jnp.zeros_like(j00)
    x0, x1, x2, x3 = _chol_solve4(
        (j00 + eps, zero, j02, j03, j11 + eps, j12, j13,
         j22 + eps, j23, j33 + eps),
        (g0, g1, g2, g3))
    return -jnp.stack([x0, x1, x2, x3], axis=-1)


# ----------------------------------------------------------------------------
# LM solver wrapper (matches the reference module's forward semantics)
# ----------------------------------------------------------------------------
class LMSolverPallas:
    def __init__(self, dof=4, num_iter=10, min_lm_diagonal=1e-06,
                 max_lm_diagonal=1e+32, min_relative_decrease=0.001,
                 initial_trust_region_radius=30.0,
                 max_trust_region_radius=1e+16, eps=1e-05,
                 normalize=False, init_solver=None):
        assert dof == 4, "Only the 4-DoF [x, y, z, yaw] branch is implemented"
        # TODO(synk): 6-DoF quaternion branch needs camera.get_quaternion_transfrom_mat.
        self.dof = dof
        self.num_iter = num_iter
        self.min_lm_diagonal = min_lm_diagonal
        self.max_lm_diagonal = max_lm_diagonal
        self.min_relative_decrease = min_relative_decrease
        self.initial_trust_region_radius = initial_trust_region_radius
        self.max_trust_region_radius = max_trust_region_radius
        self.eps = eps
        self.normalize = normalize
        self.init_solver = init_solver
        # TODO(synk): init_solver / force_init_solve / fast_mode (pure GN) /
        # pnp_normalize paths are external modules; not reproduced.

    def _run(self, x3d, x2d, w2d, camera, pose, num_iter):
        pts, pose_p, cam_p = _pack_inputs(x3d, x2d, w2d, pose, camera)
        pose_out, eval_out = _lm_pallas(
            pts, pose_p, cam_p,
            num_iter=num_iter,
            min_lm_diag=self.min_lm_diagonal,
            max_lm_diag=self.max_lm_diagonal,
            min_rel_decrease=self.min_relative_decrease,
            init_radius=self.initial_trust_region_radius,
            max_radius=self.max_trust_region_radius,
            eps=self.eps)
        num_obj = x3d.shape[0]
        return pose_out[:num_obj], eval_out[:num_obj]

    # NOTE: the reference's solve_wrapper pinv fallback (and its spurious `[0]`
    # batch indexing) is replaced by a guarded closed-form Cholesky; the damped
    # system is SPD so the result matches torch.linalg.solve.
    def solve(self, x3d, x2d, w2d, camera, cost_fun=None, pose_init=None,
              cost_init=None, with_pose_cov=False, with_cost=False,
              force_init_solve=False, fast_mode=False, **kwargs):
        assert pose_init is not None, \
            "init_solver path not implemented (pose_init required)"
        num_obj = x3d.shape[0]
        if num_obj == 0:
            pose_opt = jnp.zeros((0, 4), jnp.float32)
            pose_cov = jnp.zeros((0, 4, 4), jnp.float32) if with_pose_cov else None
            cost = jnp.zeros((0,), jnp.float32) if with_cost else None
            return pose_opt, pose_cov, cost
        pose_opt, eval_out = self._run(x3d, x2d, w2d, camera, pose_init,
                                       self.num_iter)
        pose_cov = None
        if with_pose_cov:
            jtj = _assemble_jtj(eval_out) + jnp.eye(4, dtype=jnp.float32) * self.eps
            pose_cov = jnp.linalg.inv(jtj)
        cost = eval_out[:, 13] if with_cost else None
        return pose_opt, pose_cov, cost

    def gn_step(self, x3d, x2d, w2d, pose, camera, cost_fun=None):
        # num_iter=0 variant evaluates JtJ / J^T r at the given pose in-kernel
        _, eval_out = self._run(x3d, x2d, w2d, camera,
                                pose.astype(jnp.float32), 0)
        return _gn_step_from_eval(eval_out, self.eps)

    def pose_add(self, pose_opt, step, camera):
        return pose_opt + step   # dof == 4

    def forward(self, x3d, x2d, w2d, camera, cost_fun=None,
                with_pose_opt_plus=False, pose_init=None,
                normalize_override=None, with_pose_cov=False, with_cost=False,
                **kwargs):
        normalize = (normalize_override if isinstance(normalize_override, bool)
                     else self.normalize)
        assert not normalize, "pnp_normalize path not implemented"
        assert pose_init is not None, \
            "init_solver path not implemented (pose_init required)"
        num_obj = x3d.shape[0]
        if num_obj == 0:
            empty = jnp.zeros((0, 4), jnp.float32)
            return empty, None, None, (empty if with_pose_opt_plus else None)

        pose_opt, eval_out = self._run(x3d, x2d, w2d, camera, pose_init,
                                       self.num_iter)
        pose_cov = None
        if with_pose_cov:
            jtj = _assemble_jtj(eval_out) + jnp.eye(4, dtype=jnp.float32) * self.eps
            pose_cov = jnp.linalg.inv(jtj)
        cost = eval_out[:, 13] if with_cost else None

        if with_pose_opt_plus:
            # gn_step at pose_opt: reuse the kernel's final in-kernel evaluation
            # (no second launch / HBM re-read); closed-form 4x4 solve on host.
            step = _gn_step_from_eval(eval_out, self.eps)
            pose_opt_plus = self.pose_add(pose_opt, step, camera)
        else:
            pose_opt_plus = None
        return pose_opt, pose_cov, cost, pose_opt_plus

    __call__ = forward


# ----------------------------------------------------------------------------
# demo
# ----------------------------------------------------------------------------
def _project_ref(x3d, pose, cam):
    s = jnp.sin(pose[:, 3])[:, None]
    c = jnp.cos(pose[:, 3])[:, None]
    X, Y, Z = x3d[..., 0], x3d[..., 1], x3d[..., 2]
    xc = c * X + s * Z + pose[:, 0:1]
    yc = Y + pose[:, 1:2]
    zc = -s * X + c * Z + pose[:, 2:3]
    u = cam[:, 0:1] * xc / zc + cam[:, 2:3]
    v = cam[:, 1:2] * yc / zc + cam[:, 3:4]
    return jnp.stack([u, v], axis=-1)


if __name__ == "__main__":
    key = jax.random.PRNGKey(0)
    num_obj, num_pts = 2, 128
    k1, k2, k3 = jax.random.split(key, 3)

    x3d = jax.random.uniform(k1, (num_obj, num_pts, 3),
                             minval=-1.0, maxval=1.0).astype(jnp.float32)
    pose_gt = jnp.array([[0.10, -0.20, 4.0, 0.30],
                         [-0.15, 0.05, 5.0, -0.40]], dtype=jnp.float32)
    camera = jnp.array([[500.0, 500.0, 128.0, 128.0],
                        [480.0, 480.0, 120.0, 120.0]], dtype=jnp.float32)

    x2d = _project_ref(x3d, pose_gt, camera)
    x2d = (x2d + 0.5 * jax.random.normal(k2, x2d.shape)).astype(jnp.float32)
    w2d = jax.random.uniform(k3, (num_obj, num_pts, 2),
                             minval=0.5, maxval=1.5).astype(jnp.float32)
    pose_init = jnp.array([[0.0, 0.0, 3.5, 0.0],
                           [0.0, 0.0, 4.5, 0.0]], dtype=jnp.float32)

    solver = LMSolverPallas(dof=4, num_iter=10)
    fwd = jax.jit(functools.partial(solver.forward, with_pose_opt_plus=True))
    pose_opt, pose_cov, cost, pose_opt_plus = fwd(
        x3d, x2d, w2d, camera, pose_init=pose_init)

    jax.block_until_ready(pose_opt)
    jax.block_until_ready(pose_opt_plus)
    print("KERNEL_OK")
</pallas_src>

<mosaic_0001>
module attributes {stable_mosaic.version = 11 : i64} {
  func.func @_lm_kernel(%arg0: i32, %arg1: memref<8x8x128xf32, #tpu.memory_space<vmem>>, %arg2: memref<8x4xf32, #tpu.memory_space<vmem>>, %arg3: memref<8x4xf32, #tpu.memory_space<vmem>>, %arg4: memref<8x4xf32, #tpu.memory_space<vmem>>, %arg5: memref<8x16xf32, #tpu.memory_space<vmem>>) attributes {dimension_semantics = [#tpu.dimension_semantics<parallel>], iteration_bounds = array<i64: 1>, scalar_prefetch = 0 : i64, scratch_operands = 0 : i64, tpu.core_type = #tpu.core_type<tc>, window_params = [{transform_indices = @transform_0, window_bounds = array<i64: 8, 8, 128>}, {transform_indices = @transform_1, window_bounds = array<i64: 8, 4>}, {transform_indices = @transform_2, window_bounds = array<i64: 8, 4>}, {transform_indices = @transform_3, window_bounds = array<i64: 8, 4>}, {transform_indices = @transform_4, window_bounds = array<i64: 8, 16>}]} {
    %c0 = arith.constant 0 : index
    %c0_0 = arith.constant 0 : index
    %0 = vector.load %arg3[%c0, %c0_0] : memref<8x4xf32, #tpu.memory_space<vmem>>, vector<8x4xf32>
    %1 = vector.extract_strided_slice %0 {offsets = [0, 0], sizes = [8, 1], strides = [1, 1]} : vector<8x4xf32> to vector<8x1xf32>
    %2 = vector.extract_strided_slice %0 {offsets = [0, 1], sizes = [8, 1], strides = [1, 1]} : vector<8x4xf32> to vector<8x1xf32>
    %3 = vector.extract_strided_slice %0 {offsets = [0, 2], sizes = [8, 1], strides = [1, 1]} : vector<8x4xf32> to vector<8x1xf32>
    %4 = vector.extract_strided_slice %0 {offsets = [0, 3], sizes = [8, 1], strides = [1, 1]} : vector<8x4xf32> to vector<8x1xf32>
    %c0_1 = arith.constant 0 : index
    %c0_2 = arith.constant 0 : index
    %5 = vector.load %arg2[%c0_1, %c0_2] : memref<8x4xf32, #tpu.memory_space<vmem>>, vector<8x4xf32>
    %6 = vector.extract_strided_slice %5 {offsets = [0, 0], sizes = [8, 1], strides = [1, 1]} : vector<8x4xf32> to vector<8x1xf32>
    %7 = vector.extract_strided_slice %5 {offsets = [0, 1], sizes = [8, 1], strides = [1, 1]} : vector<8x4xf32> to vector<8x1xf32>
    %8 = vector.extract_strided_slice %5 {offsets = [0, 2], sizes = [8, 1], strides = [1, 1]} : vector<8x4xf32> to vector<8x1xf32>
    %9 = vector.extract_strided_slice %5 {offsets = [0, 3], sizes = [8, 1], strides = [1, 1]} : vector<8x4xf32> to vector<8x1xf32>
    %10 = math.sin %9 : vector<8x1xf32>
    %11 = math.cos %9 : vector<8x1xf32>
    %c0_3 = arith.constant 0 : index
    %c0_4 = arith.constant 0 : index
    %c0_5 = arith.constant 0 : index
    %12 = vector.load %arg1[%c0_3, %c0_4, %c0_5] : memref<8x8x128xf32, #tpu.memory_space<vmem>>, vector<1x8x128xf32>
    %13 = vector.shape_cast %12 : vector<1x8x128xf32> to vector<8x128xf32>
    %c1 = arith.constant 1 : index
    %c0_6 = arith.constant 0 : index
    %c0_7 = arith.constant 0 : index
    %14 = vector.load %arg1[%c1, %c0_6, %c0_7] : memref<8x8x128xf32, #tpu.memory_space<vmem>>, vector<1x8x128xf32>
    %15 = vector.shape_cast %14 : vector<1x8x128xf32> to vector<8x128xf32>
    %c2 = arith.constant 2 : index
    %c0_8 = arith.constant 0 : index
    %c0_9 = arith.constant 0 : index
    %16 = vector.load %arg1[%c2, %c0_8, %c0_9] : memref<8x8x128xf32, #tpu.memory_space<vmem>>, vector<1x8x128xf32>
    %17 = vector.shape_cast %16 : vector<1x8x128xf32> to vector<8x128xf32>
    %c3 = arith.constant 3 : index
    %c0_10 = arith.constant 0 : index
    %c0_11 = arith.constant 0 : index
    %18 = vector.load %arg1[%c3, %c0_10, %c0_11] : memref<8x8x128xf32, #tpu.memory_space<vmem>>, vector<1x8x128xf32>
    %19 = vector.shape_cast %18 : vector<1x8x128xf32> to vector<8x128xf32>
    %c4 = arith.constant 4 : index
    %c0_12 = arith.constant 0 : index
    %c0_13 = arith.constant 0 : index
    %20 = vector.load %arg1[%c4, %c0_12, %c0_13] : memref<8x8x128xf32, #tpu.memory_space<vmem>>, vector<1x8x128xf32>
    %21 = vector.shape_cast %20 : vector<1x8x128xf32> to vector<8x128xf32>
    %c5 = arith.constant 5 : index
    %c0_14 = arith.constant 0 : index
    %c0_15 = arith.constant 0 : index
    %22 = vector.load %arg1[%c5, %c0_14, %c0_15] : memref<8x8x128xf32, #tpu.memory_space<vmem>>, vector<1x8x128xf32>
    %23 = vector.shape_cast %22 : vector<1x8x128xf32> to vector<8x128xf32>
    %c6 = arith.constant 6 : index
    %c0_16 = arith.constant 0 : index
    %c0_17 = arith.constant 0 : index
    %24 = vector.load %arg1[%c6, %c0_16, %c0_17] : memref<8x8x128xf32, #tpu.memory_space<vmem>>, vector<1x8x128xf32>
    %25 = vector.shape_cast %24 : vector<1x8x128xf32> to vector<8x128xf32>
    %26 = vector.broadcast %11 : vector<8x1xf32> to vector<8x128xf32>
    %27 = arith.mulf %26, %13 : vector<8x128xf32>
    %28 = vector.broadcast %10 : vector<8x1xf32> to vector<8x128xf32>
    %29 = arith.mulf %28, %17 : vector<8x128xf32>
    %30 = arith.addf %27, %29 : vector<8x128xf32>
    %31 = vector.broadcast %6 : vector<8x1xf32> to vector<8x128xf32>
    %32 = arith.addf %30, %31 : vector<8x128xf32>
    %33 = vector.broadcast %7 : vector<8x1xf32> to vector<8x128xf32>
    %34 = arith.addf %15, %33 : vector<8x128xf32>
    %35 = vector.broadcast %11 : vector<8x1xf32> to vector<8x128xf32>
    %36 = arith.mulf %35, %17 : vector<8x128xf32>
    %37 = vector.broadcast %10 : vector<8x1xf32> to vector<8x128xf32>
    %38 = arith.mulf %37, %13 : vector<8x128xf32>
    %39 = arith.subf %36, %38 : vector<8x128xf32>
    %40 = vector.broadcast %8 : vector<8x1xf32> to vector<8x128xf32>
    %41 = arith.addf %39, %40 : vector<8x128xf32>
    %cst = arith.constant 9.99999974E-5 : f32
    %42 = vector.broadcast %cst : f32 to vector<8x128xf32>
    %43 = arith.maximumf %41, %42 : vector<8x128xf32>
    %44 = tpu.reciprocal %43 {approx = true} : vector<8x128xf32> -> vector<8x128xf32>
    %45 = arith.mulf %43, %44 : vector<8x128xf32>
    %cst_18 = arith.constant 2.000000e+00 : f32
    %46 = vector.broadcast %cst_18 : f32 to vector<8x128xf32>
    %47 = arith.subf %46, %45 : vector<8x128xf32>
    %48 = arith.mulf %44, %47 : vector<8x128xf32>
    %49 = arith.mulf %48, %48 : vector<8x128xf32>
    %50 = vector.broadcast %1 : vector<8x1xf32> to vector<8x128xf32>
    %51 = arith.mulf %50, %32 : vector<8x128xf32>
    %52 = arith.mulf %51, %48 : vector<8x128xf32>
    %53 = vector.broadcast %3 : vector<8x1xf32> to vector<8x128xf32>
    %54 = arith.addf %52, %53 : vector<8x128xf32>
    %55 = vector.broadcast %2 : vector<8x1xf32> to vector<8x128xf32>
    %56 = arith.mulf %55, %34 : vector<8x128xf32>
    %57 = arith.mulf %56, %48 : vector<8x128xf32>
    %58 = vector.broadcast %4 : vector<8x1xf32> to vector<8x128xf32>
    %59 = arith.addf %57, %58 : vector<8x128xf32>
    %60 = arith.subf %54, %19 : vector<8x128xf32>
    %61 = arith.mulf %60, %23 : vector<8x128xf32>
    %62 = arith.subf %59, %21 : vector<8x128xf32>
    %63 = arith.mulf %62, %25 : vector<8x128xf32>
    %cst_19 = arith.constant 9.99999974E-5 : f32
    %64 = vector.broadcast %cst_19 : f32 to vector<8x128xf32>
    %65 = arith.cmpf oge, %41, %64 : vector<8x128xf32>
    %cst_20 = arith.constant 1.000000e+00 : f32
    %cst_21 = arith.constant 0.000000e+00 : f32
    %66 = vector.broadcast %cst_20 : f32 to vector<8x128xf32>
    %67 = vector.broadcast %cst_21 : f32 to vector<8x128xf32>
    %68 = arith.select %65, %66, %67 : vector<8x128xi1>, vector<8x128xf32>
    %69 = vector.broadcast %1 : vector<8x1xf32> to vector<8x128xf32>
    %70 = arith.mulf %69, %48 : vector<8x128xf32>
    %71 = vector.broadcast %1 : vector<8x1xf32> to vector<8x128xf32>
    %72 = arith.mulf %71, %32 : vector<8x128xf32>
    %cst_22 = arith.constant 0.000000e+00 : f32
    %73 = vector.broadcast %cst_22 : f32 to vector<8x128xf32>
    %74 = arith.subf %73, %72 : vector<8x128xf32>
    %75 = arith.mulf %74, %49 : vector<8x128xf32>
    %76 = arith.mulf %75, %68 : vector<8x128xf32>
    %77 = vector.broadcast %2 : vector<8x1xf32> to vector<8x128xf32>
    %78 = arith.mulf %77, %48 : vector<8x128xf32>
    %79 = vector.broadcast %2 : vector<8x1xf32> to vector<8x128xf32>
    %80 = arith.mulf %79, %34 : vector<8x128xf32>
    %cst_23 = arith.constant 0.000000e+00 : f32
    %81 = vector.broadcast %cst_23 : f32 to vector<8x128xf32>
    %82 = arith.subf %81, %80 : vector<8x128xf32>
    %83 = arith.mulf %82, %49 : vector<8x128xf32>
    %84 = arith.mulf %83, %68 : vector<8x128xf32>
    %85 = vector.broadcast %11 : vector<8x1xf32> to vector<8x128xf32>
    %86 = arith.mulf %85, %17 : vector<8x128xf32>
    %87 = vector.broadcast %10 : vector<8x1xf32> to vector<8x128xf32>
    %88 = arith.mulf %87, %13 : vector<8x128xf32>
    %89 = arith.subf %86, %88 : vector<8x128xf32>
    %90 = vector.broadcast %11 : vector<8x1xf32> to vector<8x128xf32>
    %91 = arith.mulf %90, %13 : vector<8x128xf32>
    %92 = vector.broadcast %10 : vector<8x1xf32> to vector<8x128xf32>
    %93 = arith.mulf %92, %17 : vector<8x128xf32>
    %94 = arith.addf %91, %93 : vector<8x128xf32>
    %cst_24 = arith.constant 0.000000e+00 : f32
    %95 = vector.broadcast %cst_24 : f32 to vector<8x128xf32>
    %96 = arith.subf %95, %94 : vector<8x128xf32>
    %97 = arith.mulf %23, %70 : vector<8x128xf32>
    %98 = arith.mulf %23, %76 : vector<8x128xf32>
    %99 = arith.mulf %70, %89 : vector<8x128xf32>
    %100 = arith.mulf %76, %96 : vector<8x128xf32>
    %101 = arith.addf %99, %100 : vector<8x128xf32>
    %102 = arith.mulf %23, %101 : vector<8x128xf32>
    %103 = arith.mulf %25, %78 : vector<8x128xf32>
    %104 = arith.mulf %25, %84 : vector<8x128xf32>
    %105 = arith.mulf %84, %96 : vector<8x128xf32>
    %106 = arith.mulf %25, %105 : vector<8x128xf32>
    %107 = arith.mulf %97, %97 : vector<8x128xf32>
    %cst_25 = arith.constant dense<0.000000e+00> : vector<8xf32>
    %108 = vector.multi_reduction <add>, %107, %cst_25 [1] : vector<8x128xf32> to vector<8xf32>
    %109 = vector.shape_cast %108 : vector<8xf32> to vector<8x1xf32>
    %110 = arith.mulf %97, %98 : vector<8x128xf32>
    %cst_26 = arith.constant dense<0.000000e+00> : vector<8xf32>
    %111 = vector.multi_reduction <add>, %110, %cst_26 [1] : vector<8x128xf32> to vector<8xf32>
    %112 = vector.shape_cast %111 : vector<8xf32> to vector<8x1xf32>
    %113 = arith.mulf %97, %102 : vector<8x128xf32>
    %cst_27 = arith.constant dense<0.000000e+00> : vector<8xf32>
    %114 = vector.multi_reduction <add>, %113, %cst_27 [1] : vector<8x128xf32> to vector<8xf32>
    %115 = vector.shape_cast %114 : vector<8xf32> to vector<8x1xf32>
    %116 = arith.mulf %103, %103 : vector<8x128xf32>
    %cst_28 = arith.constant dense<0.000000e+00> : vector<8xf32>
    %117 = vector.multi_reduction <add>, %116, %cst_28 [1] : vector<8x128xf32> to vector<8xf32>
    %118 = vector.shape_cast %117 : vector<8xf32> to vector<8x1xf32>
    %119 = arith.mulf %103, %104 : vector<8x128xf32>
    %cst_29 = arith.constant dense<0.000000e+00> : vector<8xf32>
    %120 = vector.multi_reduction <add>, %119, %cst_29 [1] : vector<8x128xf32> to vector<8xf32>
    %121 = vector.shape_cast %120 : vector<8xf32> to vector<8x1xf32>
    %122 = arith.mulf %103, %106 : vector<8x128xf32>
    %cst_30 = arith.constant dense<0.000000e+00> : vector<8xf32>
    %123 = vector.multi_reduction <add>, %122, %cst_30 [1] : vector<8x128xf32> to vector<8xf32>
    %124 = vector.shape_cast %123 : vector<8xf32> to vector<8x1xf32>
    %125 = arith.mulf %98, %98 : vector<8x128xf32>
    %126 = arith.mulf %104, %104 : vector<8x128xf32>
    %127 = arith.addf %125, %126 : vector<8x128xf32>
    %cst_31 = arith.constant dense<0.000000e+00> : vector<8xf32>
    %128 = vector.multi_reduction <add>, %127, %cst_31 [1] : vector<8x128xf32> to vector<8xf32>
    %129 = vector.shape_cast %128 : vector<8xf32> to vector<8x1xf32>
    %130 = arith.mulf %98, %102 : vector<8x128xf32>
    %131 = arith.mulf %104, %106 : vector<8x128xf32>
    %132 = arith.addf %130, %131 : vector<8x128xf32>
    %cst_32 = arith.constant dense<0.000000e+00> : vector<8xf32>
    %133 = vector.multi_reduction <add>, %132, %cst_32 [1] : vector<8x128xf32> to vector<8xf32>
    %134 = vector.shape_cast %133 : vector<8xf32> to vector<8x1xf32>
    %135 = arith.mulf %102, %102 : vector<8x128xf32>
    %136 = arith.mulf %106, %106 : vector<8x128xf32>
    %137 = arith.addf %135, %136 : vector<8x128xf32>
    %cst_33 = arith.constant dense<0.000000e+00> : vector<8xf32>
    %138 = vector.multi_reduction <add>, %137, %cst_33 [1] : vector<8x128xf32> to vector<8xf32>
    %139 = vector.shape_cast %138 : vector<8xf32> to vector<8x1xf32>
    %140 = arith.mulf %97, %61 : vector<8x128xf32>
    %cst_34 = arith.constant dense<0.000000e+00> : vector<8xf32>
    %141 = vector.multi_reduction <add>, %140, %cst_34 [1] : vector<8x128xf32> to vector<8xf32>
    %142 = vector.shape_cast %141 : vector<8xf32> to vector<8x1xf32>
    %143 = arith.mulf %103, %63 : vector<8x128xf32>
    %cst_35 = arith.constant dense<0.000000e+00> : vector<8xf32>
    %144 = vector.multi_reduction <add>, %143, %cst_35 [1] : vector<8x128xf32> to vector<8xf32>
    %145 = vector.shape_cast %144 : vector<8xf32> to vector<8x1xf32>
    %146 = arith.mulf %98, %61 : vector<8x128xf32>
    %147 = arith.mulf %104, %63 : vector<8x128xf32>
    %148 = arith.addf %146, %147 : vector<8x128xf32>
    %cst_36 = arith.constant dense<0.000000e+00> : vector<8xf32>
    %149 = vector.multi_reduction <add>, %148, %cst_36 [1] : vector<8x128xf32> to vector<8xf32>
    %150 = vector.shape_cast %149 : vector<8xf32> to vector<8x1xf32>
    %151 = arith.mulf %102, %61 : vector<8x128xf32>
    %152 = arith.mulf %106, %63 : vector<8x128xf32>
    %153 = arith.addf %151, %152 : vector<8x128xf32>
    %cst_37 = arith.constant dense<0.000000e+00> : vector<8xf32>
    %154 = vector.multi_reduction <add>, %153, %cst_37 [1] : vector<8x128xf32> to vector<8xf32>
    %155 = vector.shape_cast %154 : vector<8xf32> to vector<8x1xf32>
    %156 = arith.mulf %61, %61 : vector<8x128xf32>
    %157 = arith.mulf %63, %63 : vector<8x128xf32>
    %158 = arith.addf %156, %157 : vector<8x128xf32>
    %cst_38 = arith.constant dense<0.000000e+00> : vector<8xf32>
    %159 = vector.multi_reduction <add>, %158, %cst_38 [1] : vector<8x128xf32> to vector<8xf32>
    %160 = vector.shape_cast %159 : vector<8xf32> to vector<8x1xf32>
    %cst_39 = arith.constant 3.000000e+01 : f32
    %161 = vector.broadcast %cst_39 : f32 to vector<8x1xf32>
    %cst_40 = arith.constant 2.000000e+00 : f32
    %162 = vector.broadcast %cst_40 : f32 to vector<8x1xf32>
    %c0_i32 = arith.constant 0 : i32
    %c10_i32 = arith.constant 10 : i32
    %163 = arith.addi %c0_i32, %c10_i32 : i32
    %c1_i32 = arith.constant 1 : i32
    %164:20 = scf.for %arg6 = %c0_i32 to %163 step %c1_i32 iter_args(%arg7 = %6, %arg8 = %7, %arg9 = %8, %arg10 = %9, %arg11 = %109, %arg12 = %112, %arg13 = %115, %arg14 = %118, %arg15 = %121, %arg16 = %124, %arg17 = %129, %arg18 = %134, %arg19 = %139, %arg20 = %142, %arg21 = %145, %arg22 = %150, %arg23 = %155, %arg24 = %160, %arg25 = %161, %arg26 = %162) -> (vector<8x1xf32>, vector<8x1xf32>, vector<8x1xf32>, vector<8x1xf32>, vector<8x1xf32>, vector<8x1xf32>, vector<8x1xf32>, vector<8x1xf32>, vector<8x1xf32>, vector<8x1xf32>, vector<8x1xf32>, vector<8x1xf32>, vector<8x1xf32>, vector<8x1xf32>, vector<8x1xf32>, vector<8x1xf32>, vector<8x1xf32>, vector<8x1xf32>, vector<8x1xf32>, vector<8x1xf32>)  : i32 {
      %cst_72 = arith.constant 0.000000e+00 : f32
      %185 = vector.broadcast %cst_72 : f32 to vector<8x1xf32>
      %cst_73 = arith.constant 9.99999997E-7 : f32
      %cst_74 = arith.constant 1.000000e+32 : f32
      %186 = vector.broadcast %cst_73 : f32 to vector<8x1xf32>
      %187 = arith.maximumf %186, %arg11 : vector<8x1xf32>
      %188 = vector.broadcast %cst_74 : f32 to vector<8x1xf32>
      %189 = arith.minimumf %188, %187 : vector<8x1xf32>
      %190 = arith.divf %189, %arg25 : vector<8x1xf32>
      %cst_75 = arith.constant 9.99999974E-6 : f32
      %191 = vector.broadcast %cst_75 : f32 to vector<8x1xf32>
      %192 = arith.addf %190, %191 : vector<8x1xf32>
      %cst_76 = arith.constant 9.99999974E-6 : f32
      %193 = vector.broadcast %cst_76 : f32 to vector<8x1xf32>
      %194 = arith.maximumf %192, %193 : vector<8x1xf32>
      %195 = arith.addf %arg11, %194 : vector<8x1xf32>
      %cst_77 = arith.constant 9.99999997E-7 : f32
      %cst_78 = arith.constant 1.000000e+32 : f32
      %196 = vector.broadcast %cst_77 : f32 to vector<8x1xf32>
      %197 = arith.maximumf %196, %arg14 : vector<8x1xf32>
      %198 = vector.broadcast %cst_78 : f32 to vector<8x1xf32>
      %199 = arith.minimumf %198, %197 : vector<8x1xf32>
      %200 = arith.divf %199, %arg25 : vector<8x1xf32>
      %cst_79 = arith.constant 9.99999974E-6 : f32
      %201 = vector.broadcast %cst_79 : f32 to vector<8x1xf32>
      %202 = arith.addf %200, %201 : vector<8x1xf32>
      %cst_80 = arith.constant 9.99999974E-6 : f32
      %203 = vector.broadcast %cst_80 : f32 to vector<8x1xf32>
      %204 = arith.maximumf %202, %203 : vector<8x1xf32>
      %205 = arith.addf %arg14, %204 : vector<8x1xf32>
      %cst_81 = arith.constant 9.99999997E-7 : f32
      %cst_82 = arith.constant 1.000000e+32 : f32
      %206 = vector.broadcast %cst_81 : f32 to vector<8x1xf32>
      %207 = arith.maximumf %206, %arg17 : vector<8x1xf32>
      %208 = vector.broadcast %cst_82 : f32 to vector<8x1xf32>
      %209 = arith.minimumf %208, %207 : vector<8x1xf32>
      %210 = arith.divf %209, %arg25 : vector<8x1xf32>
      %cst_83 = arith.constant 9.99999974E-6 : f32
      %211 = vector.broadcast %cst_83 : f32 to vector<8x1xf32>
      %212 = arith.addf %210, %211 : vector<8x1xf32>
      %cst_84 = arith.constant 9.99999974E-6 : f32
      %213 = vector.broadcast %cst_84 : f32 to vector<8x1xf32>
      %214 = arith.maximumf %212, %213 : vector<8x1xf32>
      %215 = arith.addf %arg17, %214 : vector<8x1xf32>
      %cst_85 = arith.constant 9.99999997E-7 : f32
      %cst_86 = arith.constant 1.000000e+32 : f32
      %216 = vector.broadcast %cst_85 : f32 to vector<8x1xf32>
      %217 = arith.maximumf %216, %arg19 : vector<8x1xf32>
      %218 = vector.broadcast %cst_86 : f32 to vector<8x1xf32>
      %219 = arith.minimumf %218, %217 : vector<8x1xf32>
      %220 = arith.divf %219, %arg25 : vector<8x1xf32>
      %cst_87 = arith.constant 9.99999974E-6 : f32
      %221 = vector.broadcast %cst_87 : f32 to vector<8x1xf32>
      %222 = arith.addf %220, %221 : vector<8x1xf32>
      %cst_88 = arith.constant 9.99999974E-6 : f32
      %223 = vector.broadcast %cst_88 : f32 to vector<8x1xf32>
      %224 = arith.maximumf %222, %223 : vector<8x1xf32>
      %225 = arith.addf %arg19, %224 : vector<8x1xf32>
      %cst_89 = arith.constant 9.99999996E-13 : f32
      %226 = vector.broadcast %cst_89 : f32 to vector<8x1xf32>
      %227 = arith.maximumf %195, %226 : vector<8x1xf32>
      %228 = math.sqrt %227 : vector<8x1xf32>
      %cst_90 = arith.constant 1.000000e+00 : f32
      %229 = vector.broadcast %cst_90 : f32 to vector<8x1xf32>
      %230 = arith.divf %229, %228 : vector<8x1xf32>
      %231 = arith.mulf %185, %230 : vector<8x1xf32>
      %232 = arith.mulf %arg12, %230 : vector<8x1xf32>
      %233 = arith.mulf %arg13, %230 : vector<8x1xf32>
      %234 = arith.mulf %231, %231 : vector<8x1xf32>
      %235 = arith.subf %205, %234 : vector<8x1xf32>
      %cst_91 = arith.constant 9.99999996E-13 : f32
      %236 = vector.broadcast %cst_91 : f32 to vector<8x1xf32>
      %237 = arith.maximumf %235, %236 : vector<8x1xf32>
      %238 = math.sqrt %237 : vector<8x1xf32>
      %cst_92 = arith.constant 1.000000e+00 : f32
      %239 = vector.broadcast %cst_92 : f32 to vector<8x1xf32>
      %240 = arith.divf %239, %238 : vector<8x1xf32>
      %241 = arith.mulf %232, %231 : vector<8x1xf32>
      %242 = arith.subf %arg15, %241 : vector<8x1xf32>
      %243 = arith.mulf %242, %240 : vector<8x1xf32>
      %244 = arith.mulf %233, %231 : vector<8x1xf32>
      %245 = arith.subf %arg16, %244 : vector<8x1xf32>
      %246 = arith.mulf %245, %240 : vector<8x1xf32>
      %247 = arith.mulf %232, %232 : vector<8x1xf32>
      %248 = arith.subf %215, %247 : vector<8x1xf32>
      %249 = arith.mulf %243, %243 : vector<8x1xf32>
      %250 = arith.subf %248, %249 : vector<8x1xf32>
      %cst_93 = arith.constant 9.99999996E-13 : f32
      %251 = vector.broadcast %cst_93 : f32 to vector<8x1xf32>
      %252 = arith.maximumf %250, %251 : vector<8x1xf32>
      %253 = math.sqrt %252 : vector<8x1xf32>
      %cst_94 = arith.constant 1.000000e+00 : f32
      %254 = vector.broadcast %cst_94 : f32 to vector<8x1xf32>
      %255 = arith.divf %254, %253 : vector<8x1xf32>
      %256 = arith.mulf %233, %232 : vector<8x1xf32>
      %257 = arith.subf %arg18, %256 : vector<8x1xf32>
      %258 = arith.mulf %246, %243 : vector<8x1xf32>
      %259 = arith.subf %257, %258 : vector<8x1xf32>
      %260 = arith.mulf %259, %255 : vector<8x1xf32>
      %261 = arith.mulf %233, %233 : vector<8x1xf32>
      %262 = arith.subf %225, %261 : vector<8x1xf32>
      %263 = arith.mulf %246, %246 : vector<8x1xf32>
      %264 = arith.subf %262, %263 : vector<8x1xf32>
      %265 = arith.mulf %260, %260 : vector<8x1xf32>
      %266 = arith.subf %264, %265 : vector<8x1xf32>
      %cst_95 = arith.constant 9.99999996E-13 : f32
      %267 = vector.broadcast %cst_95 : f32 to vector<8x1xf32>
      %268 = arith.maximumf %266, %267 : vector<8x1xf32>
      %269 = math.sqrt %268 : vector<8x1xf32>
      %cst_96 = arith.constant 1.000000e+00 : f32
      %270 = vector.broadcast %cst_96 : f32 to vector<8x1xf32>
      %271 = arith.divf %270, %269 : vector<8x1xf32>
      %272 = arith.mulf %arg20, %230 : vector<8x1xf32>
      %273 = arith.mulf %231, %272 : vector<8x1xf32>
      %274 = arith.subf %arg21, %273 : vector<8x1xf32>
      %275 = arith.mulf %274, %240 : vector<8x1xf32>
      %276 = arith.mulf %232, %272 : vector<8x1xf32>
      %277 = arith.subf %arg22, %276 : vector<8x1xf32>
      %278 = arith.mulf %243, %275 : vector<8x1xf32>
      %279 = arith.subf %277, %278 : vector<8x1xf32>
      %280 = arith.mulf %279, %255 : vector<8x1xf32>
      %281 = arith.mulf %233, %272 : vector<8x1xf32>
      %282 = arith.subf %arg23, %281 : vector<8x1xf32>
      %283 = arith.mulf %246, %275 : vector<8x1xf32>
      %284 = arith.subf %282, %283 : vector<8x1xf32>
      %285 = arith.mulf %260, %280 : vector<8x1xf32>
      %286 = arith.subf %284, %285 : vector<8x1xf32>
      %287 = arith.mulf %286, %271 : vector<8x1xf32>
      %288 = arith.mulf %287, %271 : vector<8x1xf32>
      %289 = arith.mulf %260, %288 : vector<8x1xf32>
      %290 = arith.subf %280, %289 : vector<8x1xf32>
      %291 = arith.mulf %290, %255 : vector<8x1xf32>
      %292 = arith.mulf %243, %291 : vector<8x1xf32>
      %293 = arith.subf %275, %292 : vector<8x1xf32>
      %294 = arith.mulf %246, %288 : vector<8x1xf32>
      %295 = arith.subf %293, %294 : vector<8x1xf32>
      %296 = arith.mulf %295, %240 : vector<8x1xf32>
      %297 = arith.mulf %231, %296 : vector<8x1xf32>
      %298 = arith.subf %272, %297 : vector<8x1xf32>
      %299 = arith.mulf %232, %291 : vector<8x1xf32>
      %300 = arith.subf %298, %299 : vector<8x1xf32>
      %301 = arith.mulf %233, %288 : vector<8x1xf32>
      %302 = arith.subf %300, %301 : vector<8x1xf32>
      %303 = arith.mulf %302, %230 : vector<8x1xf32>
      %cst_97 = arith.constant 0.000000e+00 : f32
      %304 = vector.broadcast %cst_97 : f32 to vector<8x1xf32>
      %305 = arith.subf %304, %303 : vector<8x1xf32>
      %cst_98 = arith.constant 0.000000e+00 : f32
      %306 = vector.broadcast %cst_98 : f32 to vector<8x1xf32>
      %307 = arith.subf %306, %296 : vector<8x1xf32>
      %cst_99 = arith.constant 0.000000e+00 : f32
      %308 = vector.broadcast %cst_99 : f32 to vector<8x1xf32>
      %309 = arith.subf %308, %291 : vector<8x1xf32>
      %cst_100 = arith.constant 0.000000e+00 : f32
      %310 = vector.broadcast %cst_100 : f32 to vector<8x1xf32>
      %311 = arith.subf %310, %288 : vector<8x1xf32>
      %312 = arith.addf %arg7, %305 : vector<8x1xf32>
      %313 = arith.addf %arg8, %307 : vector<8x1xf32>
      %314 = arith.addf %arg9, %309 : vector<8x1xf32>
      %315 = arith.addf %arg10, %311 : vector<8x1xf32>
      %316 = math.sin %315 : vector<8x1xf32>
      %317 = math.cos %315 : vector<8x1xf32>
      %c0_101 = arith.constant 0 : index
      %c0_102 = arith.constant 0 : index
      %c0_103 = arith.constant 0 : index
      %318 = vector.load %arg1[%c0_101, %c0_102, %c0_103] : memref<8x8x128xf32, #tpu.memory_space<vmem>>, vector<1x8x128xf32>
      %319 = vector.shape_cast %318 : vector<1x8x128xf32> to vector<8x128xf32>
      %c1_104 = arith.constant 1 : index
      %c0_105 = arith.constant 0 : index
      %c0_106 = arith.constant 0 : index
      %320 = vector.load %arg1[%c1_104, %c0_105, %c0_106] : memref<8x8x128xf32, #tpu.memory_space<vmem>>, vector<1x8x128xf32>
      %321 = vector.shape_cast %320 : vector<1x8x128xf32> to vector<8x128xf32>
      %c2_107 = arith.constant 2 : index
      %c0_108 = arith.constant 0 : index
      %c0_109 = arith.constant 0 : index
      %322 = vector.load %arg1[%c2_107, %c0_108, %c0_109] : memref<8x8x128xf32, #tpu.memory_space<vmem>>, vector<1x8x128xf32>
      %323 = vector.shape_cast %322 : vector<1x8x128xf32> to vector<8x128xf32>
      %c3_110 = arith.constant 3 : index
      %c0_111 = arith.constant 0 : index
      %c0_112 = arith.constant 0 : index
      %324 = vector.load %arg1[%c3_110, %c0_111, %c0_112] : memref<8x8x128xf32, #tpu.memory_space<vmem>>, vector<1x8x128xf32>
      %325 = vector.shape_cast %324 : vector<1x8x128xf32> to vector<8x128xf32>
      %c4_113 = arith.constant 4 : index
      %c0_114 = arith.constant 0 : index
      %c0_115 = arith.constant 0 : index
      %326 = vector.load %arg1[%c4_113, %c0_114, %c0_115] : memref<8x8x128xf32, #tpu.memory_space<vmem>>, vector<1x8x128xf32>
      %327 = vector.shape_cast %326 : vector<1x8x128xf32> to vector<8x128xf32>
      %c5_116 = arith.constant 5 : index
      %c0_117 = arith.constant 0 : index
      %c0_118 = arith.constant 0 : index
      %328 = vector.load %arg1[%c5_116, %c0_117, %c0_118] : memref<8x8x128xf32, #tpu.memory_space<vmem>>, vector<1x8x128xf32>
      %329 = vector.shape_cast %328 : vector<1x8x128xf32> to vector<8x128xf32>
      %c6_119 = arith.constant 6 : index
      %c0_120 = arith.constant 0 : index
      %c0_121 = arith.constant 0 : index
      %330 = vector.load %arg1[%c6_119, %c0_120, %c0_121] : memref<8x8x128xf32, #tpu.memory_space<vmem>>, vector<1x8x128xf32>
      %331 = vector.shape_cast %330 : vector<1x8x128xf32> to vector<8x128xf32>
      %332 = vector.broadcast %317 : vector<8x1xf32> to vector<8x128xf32>
      %333 = arith.mulf %332, %319 : vector<8x128xf32>
      %334 = vector.broadcast %316 : vector<8x1xf32> to vector<8x128xf32>
      %335 = arith.mulf %334, %323 : vector<8x128xf32>
      %336 = arith.addf %333, %335 : vector<8x128xf32>
      %337 = vector.broadcast %312 : vector<8x1xf32> to vector<8x128xf32>
      %338 = arith.addf %336, %337 : vector<8x128xf32>
      %339 = vector.broadcast %313 : vector<8x1xf32> to vector<8x128xf32>
      %340 = arith.addf %321, %339 : vector<8x128xf32>
      %341 = vector.broadcast %317 : vector<8x1xf32> to vector<8x128xf32>
      %342 = arith.mulf %341, %323 : vector<8x128xf32>
      %343 = vector.broadcast %316 : vector<8x1xf32> to vector<8x128xf32>
      %344 = arith.mulf %343, %319 : vector<8x128xf32>
      %345 = arith.subf %342, %344 : vector<8x128xf32>
      %346 = vector.broadcast %314 : vector<8x1xf32> to vector<8x128xf32>
      %347 = arith.addf %345, %346 : vector<8x128xf32>
      %cst_122 = arith.constant 9.99999974E-5 : f32
      %348 = vector.broadcast %cst_122 : f32 to vector<8x128xf32>
      %349 = arith.maximumf %347, %348 : vector<8x128xf32>
      %350 = tpu.reciprocal %349 {approx = true} : vector<8x128xf32> -> vector<8x128xf32>
      %351 = arith.mulf %349, %350 : vector<8x128xf32>
      %cst_123 = arith.constant 2.000000e+00 : f32
      %352 = vector.broadcast %cst_123 : f32 to vector<8x128xf32>
      %353 = arith.subf %352, %351 : vector<8x128xf32>
      %354 = arith.mulf %350, %353 : vector<8x128xf32>
      %355 = arith.mulf %354, %354 : vector<8x128xf32>
      %356 = vector.broadcast %1 : vector<8x1xf32> to vector<8x128xf32>
      %357 = arith.mulf %356, %338 : vector<8x128xf32>
      %358 = arith.mulf %357, %354 : vector<8x128xf32>
      %359 = vector.broadcast %3 : vector<8x1xf32> to vector<8x128xf32>
      %360 = arith.addf %358, %359 : vector<8x128xf32>
      %361 = vector.broadcast %2 : vector<8x1xf32> to vector<8x128xf32>
      %362 = arith.mulf %361, %340 : vector<8x128xf32>
      %363 = arith.mulf %362, %354 : vector<8x128xf32>
      %364 = vector.broadcast %4 : vector<8x1xf32> to vector<8x128xf32>
      %365 = arith.addf %363, %364 : vector<8x128xf32>
      %366 = arith.subf %360, %325 : vector<8x128xf32>
      %367 = arith.mulf %366, %329 : vector<8x128xf32>
      %368 = arith.subf %365, %327 : vector<8x128xf32>
      %369 = arith.mulf %368, %331 : vector<8x128xf32>
      %cst_124 = arith.constant 9.99999974E-5 : f32
      %370 = vector.broadcast %cst_124 : f32 to vector<8x128xf32>
      %371 = arith.cmpf oge, %347, %370 : vector<8x128xf32>
      %cst_125 = arith.constant 1.000000e+00 : f32
      %cst_126 = arith.constant 0.000000e+00 : f32
      %372 = vector.broadcast %cst_125 : f32 to vector<8x128xf32>
      %373 = vector.broadcast %cst_126 : f32 to vector<8x128xf32>
      %374 = arith.select %371, %372, %373 : vector<8x128xi1>, vector<8x128xf32>
      %375 = vector.broadcast %1 : vector<8x1xf32> to vector<8x128xf32>
      %376 = arith.mulf %375, %354 : vector<8x128xf32>
      %377 = vector.broadcast %1 : vector<8x1xf32> to vector<8x128xf32>
      %378 = arith.mulf %377, %338 : vector<8x128xf32>
      %cst_127 = arith.constant 0.000000e+00 : f32
      %379 = vector.broadcast %cst_127 : f32 to vector<8x128xf32>
      %380 = arith.subf %379, %378 : vector<8x128xf32>
      %381 = arith.mulf %380, %355 : vector<8x128xf32>
      %382 = arith.mulf %381, %374 : vector<8x128xf32>
      %383 = vector.broadcast %2 : vector<8x1xf32> to vector<8x128xf32>
      %384 = arith.mulf %383, %354 : vector<8x128xf32>
      %385 = vector.broadcast %2 : vector<8x1xf32> to vector<8x128xf32>
      %386 = arith.mulf %385, %340 : vector<8x128xf32>
      %cst_128 = arith.constant 0.000000e+00 : f32
      %387 = vector.broadcast %cst_128 : f32 to vector<8x128xf32>
      %388 = arith.subf %387, %386 : vector<8x128xf32>
      %389 = arith.mulf %388, %355 : vector<8x128xf32>
      %390 = arith.mulf %389, %374 : vector<8x128xf32>
      %391 = vector.broadcast %317 : vector<8x1xf32> to vector<8x128xf32>
      %392 = arith.mulf %391, %323 : vector<8x128xf32>
      %393 = vector.broadcast %316 : vector<8x1xf32> to vector<8x128xf32>
      %394 = arith.mulf %393, %319 : vector<8x128xf32>
      %395 = arith.subf %392, %394 : vector<8x128xf32>
      %396 = vector.broadcast %317 : vector<8x1xf32> to vector<8x128xf32>
      %397 = arith.mulf %396, %319 : vector<8x128xf32>
      %398 = vector.broadcast %316 : vector<8x1xf32> to vector<8x128xf32>
      %399 = arith.mulf %398, %323 : vector<8x128xf32>
      %400 = arith.addf %397, %399 : vector<8x128xf32>
      %cst_129 = arith.constant 0.000000e+00 : f32
      %401 = vector.broadcast %cst_129 : f32 to vector<8x128xf32>
      %402 = arith.subf %401, %400 : vector<8x128xf32>
      %403 = arith.mulf %329, %376 : vector<8x128xf32>
      %404 = arith.mulf %329, %382 : vector<8x128xf32>
      %405 = arith.mulf %376, %395 : vector<8x128xf32>
      %406 = arith.mulf %382, %402 : vector<8x128xf32>
      %407 = arith.addf %405, %406 : vector<8x128xf32>
      %408 = arith.mulf %329, %407 : vector<8x128xf32>
      %409 = arith.mulf %331, %384 : vector<8x128xf32>
      %410 = arith.mulf %331, %390 : vector<8x128xf32>
      %411 = arith.mulf %390, %402 : vector<8x128xf32>
      %412 = arith.mulf %331, %411 : vector<8x128xf32>
      %413 = arith.mulf %403, %403 : vector<8x128xf32>
      %cst_130 = arith.constant dense<0.000000e+00> : vector<8xf32>
      %414 = vector.multi_reduction <add>, %413, %cst_130 [1] : vector<8x128xf32> to vector<8xf32>
      %415 = vector.shape_cast %414 : vector<8xf32> to vector<8x1xf32>
      %416 = arith.mulf %403, %404 : vector<8x128xf32>
      %cst_131 = arith.constant dense<0.000000e+00> : vector<8xf32>
      %417 = vector.multi_reduction <add>, %416, %cst_131 [1] : vector<8x128xf32> to vector<8xf32>
      %418 = vector.shape_cast %417 : vector<8xf32> to vector<8x1xf32>
      %419 = arith.mulf %403, %408 : vector<8x128xf32>
      %cst_132 = arith.constant dense<0.000000e+00> : vector<8xf32>
      %420 = vector.multi_reduction <add>, %419, %cst_132 [1] : vector<8x128xf32> to vector<8xf32>
      %421 = vector.shape_cast %420 : vector<8xf32> to vector<8x1xf32>
      %422 = arith.mulf %409, %409 : vector<8x128xf32>
      %cst_133 = arith.constant dense<0.000000e+00> : vector<8xf32>
      %423 = vector.multi_reduction <add>, %422, %cst_133 [1] : vector<8x128xf32> to vector<8xf32>
      %424 = vector.shape_cast %423 : vector<8xf32> to vector<8x1xf32>
      %425 = arith.mulf %409, %410 : vector<8x128xf32>
      %cst_134 = arith.constant dense<0.000000e+00> : vector<8xf32>
      %426 = vector.multi_reduction <add>, %425, %cst_134 [1] : vector<8x128xf32> to vector<8xf32>
      %427 = vector.shape_cast %426 : vector<8xf32> to vector<8x1xf32>
      %428 = arith.mulf %409, %412 : vector<8x128xf32>
      %cst_135 = arith.constant dense<0.000000e+00> : vector<8xf32>
      %429 = vector.multi_reduction <add>, %428, %cst_135 [1] : vector<8x128xf32> to vector<8xf32>
      %430 = vector.shape_cast %429 : vector<8xf32> to vector<8x1xf32>
      %431 = arith.mulf %404, %404 : vector<8x128xf32>
      %432 = arith.mulf %410, %410 : vector<8x128xf32>
      %433 = arith.addf %431, %432 : vector<8x128xf32>
      %cst_136 = arith.constant dense<0.000000e+00> : vector<8xf32>
      %434 = vector.multi_reduction <add>, %433, %cst_136 [1] : vector<8x128xf32> to vector<8xf32>
      %435 = vector.shape_cast %434 : vector<8xf32> to vector<8x1xf32>
      %436 = arith.mulf %404, %408 : vector<8x128xf32>
      %437 = arith.mulf %410, %412 : vector<8x128xf32>
      %438 = arith.addf %436, %437 : vector<8x128xf32>
      %cst_137 = arith.constant dense<0.000000e+00> : vector<8xf32>
      %439 = vector.multi_reduction <add>, %438, %cst_137 [1] : vector<8x128xf32> to vector<8xf32>
      %440 = vector.shape_cast %439 : vector<8xf32> to vector<8x1xf32>
      %441 = arith.mulf %408, %408 : vector<8x128xf32>
      %442 = arith.mulf %412, %412 : vector<8x128xf32>
      %443 = arith.addf %441, %442 : vector<8x128xf32>
      %cst_138 = arith.constant dense<0.000000e+00> : vector<8xf32>
      %444 = vector.multi_reduction <add>, %443, %cst_138 [1] : vector<8x128xf32> to vector<8xf32>
      %445 = vector.shape_cast %444 : vector<8xf32> to vector<8x1xf32>
      %446 = arith.mulf %403, %367 : vector<8x128xf32>
      %cst_139 = arith.constant dense<0.000000e+00> : vector<8xf32>
      %447 = vector.multi_reduction <add>, %446, %cst_139 [1] : vector<8x128xf32> to vector<8xf32>
      %448 = vector.shape_cast %447 : vector<8xf32> to vector<8x1xf32>
      %449 = arith.mulf %409, %369 : vector<8x128xf32>
      %cst_140 = arith.constant dense<0.000000e+00> : vector<8xf32>
      %450 = vector.multi_reduction <add>, %449, %cst_140 [1] : vector<8x128xf32> to vector<8xf32>
      %451 = vector.shape_cast %450 : vector<8xf32> to vector<8x1xf32>
      %452 = arith.mulf %404, %367 : vector<8x128xf32>
      %453 = arith.mulf %410, %369 : vector<8x128xf32>
      %454 = arith.addf %452, %453 : vector<8x128xf32>
      %cst_141 = arith.constant dense<0.000000e+00> : vector<8xf32>
      %455 = vector.multi_reduction <add>, %454, %cst_141 [1] : vector<8x128xf32> to vector<8xf32>
      %456 = vector.shape_cast %455 : vector<8xf32> to vector<8x1xf32>
      %457 = arith.mulf %408, %367 : vector<8x128xf32>
      %458 = arith.mulf %412, %369 : vector<8x128xf32>
      %459 = arith.addf %457, %458 : vector<8x128xf32>
      %cst_142 = arith.constant dense<0.000000e+00> : vector<8xf32>
      %460 = vector.multi_reduction <add>, %459, %cst_142 [1] : vector<8x128xf32> to vector<8xf32>
      %461 = vector.shape_cast %460 : vector<8xf32> to vector<8x1xf32>
      %462 = arith.mulf %367, %367 : vector<8x128xf32>
      %463 = arith.mulf %369, %369 : vector<8x128xf32>
      %464 = arith.addf %462, %463 : vector<8x128xf32>
      %cst_143 = arith.constant dense<0.000000e+00> : vector<8xf32>
      %465 = vector.multi_reduction <add>, %464, %cst_143 [1] : vector<8x128xf32> to vector<8xf32>
      %466 = vector.shape_cast %465 : vector<8xf32> to vector<8x1xf32>
      %467 = arith.mulf %arg11, %305 : vector<8x1xf32>
      %468 = arith.mulf %arg12, %309 : vector<8x1xf32>
      %469 = arith.addf %467, %468 : vector<8x1xf32>
      %470 = arith.mulf %arg13, %311 : vector<8x1xf32>
      %471 = arith.addf %469, %470 : vector<8x1xf32>
      %472 = arith.mulf %arg14, %307 : vector<8x1xf32>
      %473 = arith.mulf %arg15, %309 : vector<8x1xf32>
      %474 = arith.addf %472, %473 : vector<8x1xf32>
      %475 = arith.mulf %arg16, %311 : vector<8x1xf32>
      %476 = arith.addf %474, %475 : vector<8x1xf32>
      %477 = arith.mulf %arg12, %305 : vector<8x1xf32>
      %478 = arith.mulf %arg15, %307 : vector<8x1xf32>
      %479 = arith.addf %477, %478 : vector<8x1xf32>
      %480 = arith.mulf %arg17, %309 : vector<8x1xf32>
      %481 = arith.addf %479, %480 : vector<8x1xf32>
      %482 = arith.mulf %arg18, %311 : vector<8x1xf32>
      %483 = arith.addf %481, %482 : vector<8x1xf32>
      %484 = arith.mulf %arg13, %305 : vector<8x1xf32>
      %485 = arith.mulf %arg16, %307 : vector<8x1xf32>
      %486 = arith.addf %484, %485 : vector<8x1xf32>
      %487 = arith.mulf %arg18, %309 : vector<8x1xf32>
      %488 = arith.addf %486, %487 : vector<8x1xf32>
      %489 = arith.mulf %arg19, %311 : vector<8x1xf32>
      %490 = arith.addf %488, %489 : vector<8x1xf32>
      %cst_144 = arith.constant 5.000000e-01 : f32
      %491 = vector.broadcast %cst_144 : f32 to vector<8x1xf32>
      %492 = arith.mulf %491, %471 : vector<8x1xf32>
      %493 = arith.addf %492, %arg20 : vector<8x1xf32>
      %494 = arith.mulf %305, %493 : vector<8x1xf32>
      %cst_145 = arith.constant 5.000000e-01 : f32
      %495 = vector.broadcast %cst_145 : f32 to vector<8x1xf32>
      %496 = arith.mulf %495, %476 : vector<8x1xf32>
      %497 = arith.addf %496, %arg21 : vector<8x1xf32>
      %498 = arith.mulf %307, %497 : vector<8x1xf32>
      %499 = arith.addf %494, %498 : vector<8x1xf32>
      %cst_146 = arith.constant 5.000000e-01 : f32
      %500 = vector.broadcast %cst_146 : f32 to vector<8x1xf32>
      %501 = arith.mulf %500, %483 : vector<8x1xf32>
      %502 = arith.addf %501, %arg22 : vector<8x1xf32>
      %503 = arith.mulf %309, %502 : vector<8x1xf32>
      %504 = arith.addf %499, %503 : vector<8x1xf32>
      %cst_147 = arith.constant 5.000000e-01 : f32
      %505 = vector.broadcast %cst_147 : f32 to vector<8x1xf32>
      %506 = arith.mulf %505, %490 : vector<8x1xf32>
      %507 = arith.addf %506, %arg23 : vector<8x1xf32>
      %508 = arith.mulf %311, %507 : vector<8x1xf32>
      %509 = arith.addf %504, %508 : vector<8x1xf32>
      %cst_148 = arith.constant 0.000000e+00 : f32
      %510 = vector.broadcast %cst_148 : f32 to vector<8x1xf32>
      %511 = arith.subf %510, %509 : vector<8x1xf32>
      %512 = arith.subf %arg24, %466 : vector<8x1xf32>
      %513 = arith.divf %512, %511 : vector<8x1xf32>
      %cst_149 = arith.constant 1.000000e-03 : f32
      %514 = vector.broadcast %cst_149 : f32 to vector<8x1xf32>
      %515 = arith.cmpf oge, %513, %514 : vector<8x1xf32>
      %cst_150 = arith.constant 0.000000e+00 : f32
      %516 = vector.broadcast %cst_150 : f32 to vector<8x1xf32>
      %517 = arith.cmpf ogt, %511, %516 : vector<8x1xf32>
      %518 = arith.andi %515, %517 : vector<8x1xi1>
      %519 = arith.select %518, %312, %arg7 : vector<8x1xi1>, vector<8x1xf32>
      %520 = arith.select %518, %313, %arg8 : vector<8x1xi1>, vector<8x1xf32>
      %521 = arith.select %518, %314, %arg9 : vector<8x1xi1>, vector<8x1xf32>
      %522 = arith.select %518, %315, %arg10 : vector<8x1xi1>, vector<8x1xf32>
      %cst_151 = arith.constant 2.000000e+00 : f32
      %523 = vector.broadcast %cst_151 : f32 to vector<8x1xf32>
      %524 = arith.mulf %523, %513 : vector<8x1xf32>
      %cst_152 = arith.constant 1.000000e+00 : f32
      %525 = vector.broadcast %cst_152 : f32 to vector<8x1xf32>
      %526 = arith.subf %524, %525 : vector<8x1xf32>
      %527 = arith.mulf %526, %526 : vector<8x1xf32>
      %528 = arith.mulf %527, %526 : vector<8x1xf32>
      %cst_153 = arith.constant 1.000000e+00 : f32
      %529 = vector.broadcast %cst_153 : f32 to vector<8x1xf32>
      %530 = arith.subf %529, %528 : vector<8x1xf32>
      %cst_154 = arith.constant 0.333333343 : f32
      %531 = vector.broadcast %cst_154 : f32 to vector<8x1xf32>
      %532 = arith.maximumf %530, %531 : vector<8x1xf32>
      %533 = arith.divf %arg25, %532 : vector<8x1xf32>
      %534 = arith.select %518, %533, %arg25 : vector<8x1xi1>, vector<8x1xf32>
      %cst_155 = arith.constant 9.99999974E-6 : f32
      %cst_156 = arith.constant 1.000000e+16 : f32
      %535 = vector.broadcast %cst_155 : f32 to vector<8x1xf32>
      %536 = arith.maximumf %535, %534 : vector<8x1xf32>
      %537 = vector.broadcast %cst_156 : f32 to vector<8x1xf32>
      %538 = arith.minimumf %537, %536 : vector<8x1xf32>
      %539 = arith.divf %538, %arg26 : vector<8x1xf32>
      %540 = arith.select %518, %538, %539 : vector<8x1xi1>, vector<8x1xf32>
      %cst_157 = arith.constant 2.000000e+00 : f32
      %541 = vector.broadcast %cst_157 : f32 to vector<8x1xf32>
      %542 = arith.mulf %arg26, %541 : vector<8x1xf32>
      %cst_158 = arith.constant 2.000000e+00 : f32
      %543 = vector.broadcast %cst_158 : f32 to vector<8x1xf32>
      %544 = arith.select %518, %543, %542 : vector<8x1xi1>, vector<8x1xf32>
      %545 = arith.select %518, %415, %arg11 : vector<8x1xi1>, vector<8x1xf32>
      %546 = arith.select %518, %418, %arg12 : vector<8x1xi1>, vector<8x1xf32>
      %547 = arith.select %518, %421, %arg13 : vector<8x1xi1>, vector<8x1xf32>
      %548 = arith.select %518, %424, %arg14 : vector<8x1xi1>, vector<8x1xf32>
      %549 = arith.select %518, %427, %arg15 : vector<8x1xi1>, vector<8x1xf32>
      %550 = arith.select %518, %430, %arg16 : vector<8x1xi1>, vector<8x1xf32>
      %551 = arith.select %518, %435, %arg17 : vector<8x1xi1>, vector<8x1xf32>
      %552 = arith.select %518, %440, %arg18 : vector<8x1xi1>, vector<8x1xf32>
      %553 = arith.select %518, %445, %arg19 : vector<8x1xi1>, vector<8x1xf32>
      %554 = arith.select %518, %448, %arg20 : vector<8x1xi1>, vector<8x1xf32>
      %555 = arith.select %518, %451, %arg21 : vector<8x1xi1>, vector<8x1xf32>
      %556 = arith.select %518, %456, %arg22 : vector<8x1xi1>, vector<8x1xf32>
      %557 = arith.select %518, %461, %arg23 : vector<8x1xi1>, vector<8x1xf32>
      %558 = arith.select %518, %466, %arg24 : vector<8x1xi1>, vector<8x1xf32>
      scf.yield %519, %520, %521, %522, %545, %546, %547, %548, %549, %550, %551, %552, %553, %554, %555, %556, %557, %558, %540, %544 : vector<8x1xf32>, vector<8x1xf32>, vector<8x1xf32>, vector<8x1xf32>, vector<8x1xf32>, vector<8x1xf32>, vector<8x1xf32>, vector<8x1xf32>, vector<8x1xf32>, vector<8x1xf32>, vector<8x1xf32>, vector<8x1xf32>, vector<8x1xf32>, vector<8x1xf32>, vector<8x1xf32>, vector<8x1xf32>, vector<8x1xf32>, vector<8x1xf32>, vector<8x1xf32>, vector<8x1xf32>
    }
    %c0_41 = arith.constant 0 : index
    %c0_42 = arith.constant 0 : index
    %165 = vector.load %arg4[%c0_41, %c0_42] : memref<8x4xf32, #tpu.memory_space<vmem>>, vector<8x1xf32>
    tpu.vector_store %arg4[%c0_41, %c0_42], %164#0 {strides = array<i32>} : memref<8x4xf32, #tpu.memory_space<vmem>>, vector<8x1xf32>,
    %c0_43 = arith.constant 0 : index
    %c1_44 = arith.constant 1 : index
    %166 = vector.load %arg4[%c0_43, %c1_44] : memref<8x4xf32, #tpu.memory_space<vmem>>, vector<8x1xf32>
    tpu.vector_store %arg4[%c0_43, %c1_44], %164#1 {strides = array<i32>} : memref<8x4xf32, #tpu.memory_space<vmem>>, vector<8x1xf32>,
    %c0_45 = arith.constant 0 : index
    %c2_46 = arith.constant 2 : index
    %167 = vector.load %arg4[%c0_45, %c2_46] : memref<8x4xf32, #tpu.memory_space<vmem>>, vector<8x1xf32>
    tpu.vector_store %arg4[%c0_45, %c2_46], %164#2 {strides = array<i32>} : memref<8x4xf32, #tpu.memory_space<vmem>>, vector<8x1xf32>,
    %c0_47 = arith.constant 0 : index
    %c3_48 = arith.constant 3 : index
    %168 = vector.load %arg4[%c0_47, %c3_48] : memref<8x4xf32, #tpu.memory_space<vmem>>, vector<8x1xf32>
    tpu.vector_store %arg4[%c0_47, %c3_48], %164#3 {strides = array<i32>} : memref<8x4xf32, #tpu.memory_space<vmem>>, vector<8x1xf32>,
    %c0_49 = arith.constant 0 : index
    %c0_50 = arith.constant 0 : index
    %169 = vector.load %arg5[%c0_49, %c0_50] : memref<8x16xf32, #tpu.memory_space<vmem>>, vector<8x1xf32>
    tpu.vector_store %arg5[%c0_49, %c0_50], %164#4 {strides = array<i32>} : memref<8x16xf32, #tpu.memory_space<vmem>>, vector<8x1xf32>,
    %c0_51 = arith.constant 0 : index
    %c1_52 = arith.constant 1 : index
    %170 = vector.load %arg5[%c0_51, %c1_52] : memref<8x16xf32, #tpu.memory_space<vmem>>, vector<8x1xf32>
    tpu.vector_store %arg5[%c0_51, %c1_52], %164#5 {strides = array<i32>} : memref<8x16xf32, #tpu.memory_space<vmem>>, vector<8x1xf32>,
    %c0_53 = arith.constant 0 : index
    %c2_54 = arith.constant 2 : index
    %171 = vector.load %arg5[%c0_53, %c2_54] : memref<8x16xf32, #tpu.memory_space<vmem>>, vector<8x1xf32>
    tpu.vector_store %arg5[%c0_53, %c2_54], %164#6 {strides = array<i32>} : memref<8x16xf32, #tpu.memory_space<vmem>>, vector<8x1xf32>,
    %c0_55 = arith.constant 0 : index
    %c3_56 = arith.constant 3 : index
    %172 = vector.load %arg5[%c0_55, %c3_56] : memref<8x16xf32, #tpu.memory_space<vmem>>, vector<8x1xf32>
    tpu.vector_store %arg5[%c0_55, %c3_56], %164#7 {strides = array<i32>} : memref<8x16xf32, #tpu.memory_space<vmem>>, vector<8x1xf32>,
    %c0_57 = arith.constant 0 : index
    %c4_58 = arith.constant 4 : index
    %173 = vector.load %arg5[%c0_57, %c4_58] : memref<8x16xf32, #tpu.memory_space<vmem>>, vector<8x1xf32>
    tpu.vector_store %arg5[%c0_57, %c4_58], %164#8 {strides = array<i32>} : memref<8x16xf32, #tpu.memory_space<vmem>>, vector<8x1xf32>,
    %c0_59 = arith.constant 0 : index
    %c5_60 = arith.constant 5 : index
    %174 = vector.load %arg5[%c0_59, %c5_60] : memref<8x16xf32, #tpu.memory_space<vmem>>, vector<8x1xf32>
    tpu.vector_store %arg5[%c0_59, %c5_60], %164#9 {strides = array<i32>} : memref<8x16xf32, #tpu.memory_space<vmem>>, vector<8x1xf32>,
    %c0_61 = arith.constant 0 : index
    %c6_62 = arith.constant 6 : index
    %175 = vector.load %arg5[%c0_61, %c6_62] : memref<8x16xf32, #tpu.memory_space<vmem>>, vector<8x1xf32>
    tpu.vector_store %arg5[%c0_61, %c6_62], %164#10 {strides = array<i32>} : memref<8x16xf32, #tpu.memory_space<vmem>>, vector<8x1xf32>,
    %c0_63 = arith.constant 0 : index
    %c7 = arith.constant 7 : index
    %176 = vector.load %arg5[%c0_63, %c7] : memref<8x16xf32, #tpu.memory_space<vmem>>, vector<8x1xf32>
    tpu.vector_store %arg5[%c0_63, %c7], %164#11 {strides = array<i32>} : memref<8x16xf32, #tpu.memory_space<vmem>>, vector<8x1xf32>,
    %c0_64 = arith.constant 0 : index
    %c8 = arith.constant 8 : index
    %177 = vector.load %arg5[%c0_64, %c8] : memref<8x16xf32, #tpu.memory_space<vmem>>, vector<8x1xf32>
    tpu.vector_store %arg5[%c0_64, %c8], %164#12 {strides = array<i32>} : memref<8x16xf32, #tpu.memory_space<vmem>>, vector<8x1xf32>,
    %c0_65 = arith.constant 0 : index
    %c9 = arith.constant 9 : index
    %178 = vector.load %arg5[%c0_65, %c9] : memref<8x16xf32, #tpu.memory_space<vmem>>, vector<8x1xf32>
    tpu.vector_store %arg5[%c0_65, %c9], %164#13 {strides = array<i32>} : memref<8x16xf32, #tpu.memory_space<vmem>>, vector<8x1xf32>,
    %c0_66 = arith.constant 0 : index
    %c10 = arith.constant 10 : index
    %179 = vector.load %arg5[%c0_66, %c10] : memref<8x16xf32, #tpu.memory_space<vmem>>, vector<8x1xf32>
    tpu.vector_store %arg5[%c0_66, %c10], %164#14 {strides = array<i32>} : memref<8x16xf32, #tpu.memory_space<vmem>>, vector<8x1xf32>,
    %c0_67 = arith.constant 0 : index
    %c11 = arith.constant 11 : index
    %180 = vector.load %arg5[%c0_67, %c11] : memref<8x16xf32, #tpu.memory_space<vmem>>, vector<8x1xf32>
    tpu.vector_store %arg5[%c0_67, %c11], %164#15 {strides = array<i32>} : memref<8x16xf32, #tpu.memory_space<vmem>>, vector<8x1xf32>,
    %c0_68 = arith.constant 0 : index
    %c12 = arith.constant 12 : index
    %181 = vector.load %arg5[%c0_68, %c12] : memref<8x16xf32, #tpu.memory_space<vmem>>, vector<8x1xf32>
    tpu.vector_store %arg5[%c0_68, %c12], %164#16 {strides = array<i32>} : memref<8x16xf32, #tpu.memory_space<vmem>>, vector<8x1xf32>,
    %c0_69 = arith.constant 0 : index
    %c13 = arith.constant 13 : index
    %182 = vector.load %arg5[%c0_69, %c13] : memref<8x16xf32, #tpu.memory_space<vmem>>, vector<8x1xf32>
    tpu.vector_store %arg5[%c0_69, %c13], %164#17 {strides = array<i32>} : memref<8x16xf32, #tpu.memory_space<vmem>>, vector<8x1xf32>,
    %cst_70 = arith.constant 0.000000e+00 : f32
    %183 = vector.broadcast %cst_70 : f32 to vector<8x2xf32>
    %c0_71 = arith.constant 0 : index
    %c14 = arith.constant 14 : index
    %184 = vector.load %arg5[%c0_71, %c14] : memref<8x16xf32, #tpu.memory_space<vmem>>, vector<8x2xf32>
    tpu.vector_store %arg5[%c0_71, %c14], %183 {strides = array<i32>} : memref<8x16xf32, #tpu.memory_space<vmem>>, vector<8x2xf32>,
    return
  }
  func.func @transform_0(%arg0: i32) -> (i32, i32, i32) {
    %c0_i32 = arith.constant 0 : i32
    %c0_i32_0 = arith.constant 0 : i32
    %c0_i32_1 = arith.constant 0 : i32
    return %c0_i32, %arg0, %c0_i32_0 : i32, i32, i32
  }
  func.func @transform_1(%arg0: i32) -> (i32, i32) {
    %c0_i32 = arith.constant 0 : i32
    %c0_i32_0 = arith.constant 0 : i32
    return %arg0, %c0_i32 : i32, i32
  }
  func.func @transform_2(%arg0: i32) -> (i32, i32) {
    %c0_i32 = arith.constant 0 : i32
    %c0_i32_0 = arith.constant 0 : i32
    return %arg0, %c0_i32 : i32, i32
  }
  func.func @transform_3(%arg0: i32) -> (i32, i32) {
    %c0_i32 = arith.constant 0 : i32
    %c0_i32_0 = arith.constant 0 : i32
    return %arg0, %c0_i32 : i32, i32
  }
  func.func @transform_4(%arg0: i32) -> (i32, i32) {
    %c0_i32 = arith.constant 0 : i32
    %c0_i32_0 = arith.constant 0 : i32
    return %arg0, %c0_i32 : i32, i32
  }
}

</mosaic_0001>

<bundles_post_ra>
// kernel: forward.1
= control target key start
LH: loop header
LB: loop body
LE: loop exit
PB: predicated region body
PF: predicated region fallthrough
CT: control target
= control target key end

     0   :  { %v1505_v0 = vmov 3   ;;  %v1506_v1 = vmov 2   ;;  %v1507_v7 = vmov 0   ;;  %v1508_v16 = vmov 683565275   ;;  %s1676_s5 = smov 0   ;;  %s2156_s1 = inlined_call_operand.vmem [shape: f32[8,4], index: 1, kind: input, shape index: {}]   ;;  %s2157_s2 = inlined_call_operand.vmem [shape: f32[8,4], index: 2, kind: input, shape index: {}]   ;;  %s2158_s0 = inlined_call_operand.vmem [shape: f32[8,8,128], index: 0, kind: input, shape index: {}]   ;;  %s2159_s3 = inlined_call_operand.vmem [shape: f32[8,4], index: 3, kind: output, shape index: {0}]   ;;  %s2160_s4 = inlined_call_operand.vmem [shape: f32[8,16], index: 4, kind: output, shape index: {1}]  }
   0x1   :  { %1288 = vset.pattern.permute.xlu0 %v1505_v0  ;;  %1289 = vset.pattern.permute.xlu1 %v1506_v1  ;;  %v1557_v2 = vld [vmem:[%s2156_s1] sm:$0xff]   ;;  %v1509_v18 = vmov 2475754826   ;;  %v1510_v20 = vmov 2131351028   ;;  %v1513_v26 = vmov 1  }
   0x2   :  { %v21_v3 = vand.u32 2139095040, %v1557_v2  ;;  %266 = vperm.xlu1 %1289, %v1557_v2   ;;  %v18_v5 = vand.u32 2147483647, %v1557_v2  ;;  %v1566_v9 = vld [vmem:[%s2157_s2] sm:$0xff]  ;;  %v1511_v22 = vmov 2102212464   ;;  %vm110_vm15 = vweird.f32 %v1557_v2 }
   0x3   :  { %v1512_v24 = vmov 920167782   ;;  %v1514_v32 = vmov 1326507024   ;;  %vm20_vm7 = vcmp.lt.s32.totalorder %v1557_v2, 0 }
   0x4   :  { %v22_v4 = vshrl.u32 %v21_v3, 23  ;;  %v25_v10 = vand.u32 8388607, %v18_v5  ;;  %vm19_vm8 = vcmp.le.f32.partialorder %v18_v5, 0.7853982 }
   0x6   :  { %v1061_v6 = vadd.s32 4294967169, %v22_v4  ;;  %1290 = vset.pattern.permute.xlu1 %v1507_v7  ;;  %v26_v13 = vor.u32 8388608, %v25_v10 }
   0x7   :  { %253 = vperm.xlu1 %1290, %v1557_v2  }
   0x8   :  { %v28_v8 = vadd.s32 1, %v1061_v6  ;;  %v66_v34 = vshll.u32 %v26_v13, 8 }
   0xa   :  { %vm29_vm0 = vcmp.gt.s32.totalorder %v28_v8, 0 }
   0xb   :  { %v30_v11 = vsel %vm29_vm0, %v28_v8, 0  ;;  %278 = vperm.xlu1 %1290, %v1566_v9  }
   0xc   :  { %v32_v12 = vand.u32 31, %v30_v11  ;;  %v31_v14 = vshrl.u32 %v30_v11, 5 }
   0xe   :  { %v33_v15 = vsub.s32 32, %v32_v12  ;;  %v35_v17 = vshll.u32 %v1508_v16, %v32_v12  ;;  %v38_v19 = vshll.u32 %v1509_v18, %v32_v12  ;;  %v41_v21 = vshll.u32 %v1510_v20, %v32_v12 }
   0xf   :  { %v44_v23 = vshll.u32 %v1511_v22, %v32_v12  ;;  %v47_v25 = vshll.u32 %v1512_v24, %v32_v12  ;;  %1292 = vset.pattern.permute.xlu1 %v1513_v26  ;;  %vm50_vm1 = vcmp.lt.s32.totalorder %v31_v14, 1  ;;  %vm53_vm2 = vcmp.lt.s32.totalorder %v31_v14, 4 }
  0x10   :  { %v34_v27 = vshrl.u32 %v1508_v16, %v33_v15  ;;  %v36_v28 = vshrl.u32 %v1509_v18, %v33_v15  ;;  %v39_v29 = vshrl.u32 %v1510_v20, %v33_v15  ;;  %v42_v30 = vshrl.u32 %v1511_v22, %v33_v15  ;;  %289 = vperm.xlu1 %1292, %v1566_v9  }
  0x11   :  { %v45_v31 = vshrl.u32 %v1512_v24, %v33_v15  ;;  %v48_v33 = vshrl.u32 %v1514_v32, %v33_v15  ;;  %vm51_vm3 = vcmp.lt.s32.totalorder %v31_v14, 2  ;;  %vm52_vm4 = vcmp.lt.s32.totalorder %v31_v14, 3 }
  0x12   :  { %v37_v35 = vor.u32 %v36_v28, %v35_v17  ;;  %v40_v36 = vor.u32 %v39_v29, %v38_v19  ;;  %v43_v37 = vor.u32 %v42_v30, %v41_v21 }
  0x13   :  { %v46_v38 = vor.u32 %v45_v31, %v44_v23  ;;  %v49_v39 = vor.u32 %v48_v33, %v47_v25 }
  0x14   :  { %v54_v40 = vsel %vm50_vm1, %v34_v27, %v37_v35  ;;  %v55_v41 = vsel %vm53_vm2, %v43_v37, 2102212464  ;;  %v58_v42 = vsel %vm50_vm1, %v37_v35, %v40_v36  ;;  %v62_v43 = vsel %vm50_vm1, %v40_v36, %v43_v37  ;;  %1294 = vset.pattern.permute.xlu1 %v1505_v0 }
  0x15   :  { %v56_v44 = vsel %vm52_vm4, %v40_v36, %v55_v41  ;;  %v59_v45 = vsel %vm53_vm2, %v46_v38, 920167782  ;;  %v63_v46 = vsel %vm53_vm2, %v49_v39, 1326507024  ;;  %295 = vperm.xlu1 %1294, %v1566_v9  }
  0x16   :  { %v60_v47 = vsel %vm52_vm4, %v43_v37, %v59_v45  ;;  %v64_v48 = vsel %vm52_vm4, %v46_v38, %v63_v46  ;;  %v57_v49 = vsel %vm51_vm3, %v54_v40, %v56_v44  ;;  %v1070_v44 = vld [vmem:[%s2158_s0 + $0x10] sm:$0xff]  ;;  %v225_v45 = vld [vmem:[%s2158_s0] sm:$0xff] }
  0x17   :  { %v61_v50 = vsel %vm51_vm3, %v58_v42, %v60_v47  ;;  %v65_v51 = vsel %vm51_vm3, %v62_v43, %v64_v48  ;;  %v73_v56 = vmul.u32 %v66_v34, %v57_v49 }
  0x18   :  { %v1575_v52 = vmul.u32.u64.low %v66_v34, %v65_v51  ;;  %v1576_v53 = vmul.u32.u64.high %v66_v34, %v65_v51, %v1575_v52  ;;  %v1578_v54 = vmul.u32.u64.low %v66_v34, %v61_v50  ;;  %v1579_v55 = vmul.u32.u64.high %v66_v34, %v61_v50, %v1578_v54 }
  0x1a   :  { %vm75_vm5 = vc.u32 %v1576_v53, %v1578_v54  ;;  %v76_v57 = vadd.s32 1, %v1579_v55  ;;  %v74_v8 = vadd.s32 %v1578_v54, %v1576_v53 }
  0x1c   :  { %v77_v58 = vsel %vm75_vm5, %v76_v57, %v1579_v55  ;;  %v1069_v55 = vld [vmem:[%s2158_s0 + $0x8] sm:$0xff] }
  0x1d   :  { %v78_v59 = vadd.s32 %v77_v58, %v73_v56 }
  0x1f   :  { %v79_v60 = vadd.s32 536870912, %v78_v59 }
  0x21   :  { %v80_v61 = vshrl.u32 %v79_v60, 30 }
  0x23   :  { %v81_v62 = vshll.u32 %v80_v61, 30  ;;  %v104_v22 = vsub.s32 4, %v80_v61 }
  0x25   :  { %v82_v63 = vsub.s32 %v78_v59, %v81_v62  ;;  %v105_v25 = vsel %vm20_vm7, %v104_v22, %v80_v61 }
  0x26   :  { %v107_v28 = vsel %vm19_vm8, 0, %v105_v25 }
  0x27   :  { %v84_v3 = vsub.s32 0, %v82_v63  ;;  %v111_v29 = vadd.s32 3, %v107_v28  ;;  %v215_v30 = vand.u32 3, %v107_v28 }
  0x29   :  { %v1062_v4 = vmin.u32 %v84_v3, %v82_v63  ;;  %v112_v31 = vand.u32 3, %v111_v29  ;;  %vm220_vm9 = vcmp.eq.s32.totalorder %v215_v30, 2  ;;  %vm217_vm11 = vcmp.eq.s32.totalorder %v215_v30, 0  ;;  %v1072_v29 = vld [vmem:[%s2158_s0 + $0x20] sm:$0xff] }
  0x2a   :  { %vm216_vm13 = vcmp.lt.s32.totalorder %v215_v30, 2 }
  0x2b   :  { %v86_v6 = vclz %v1062_v4  ;;  %vm117_vm10 = vcmp.eq.s32.totalorder %v112_v31, 2  ;;  %vm114_vm12 = vcmp.eq.s32.totalorder %v112_v31, 0  ;;  %vm113_vm14 = vcmp.lt.s32.totalorder %v112_v31, 2 }
  0x2d   :  { %v1063_v7 = vadd.s32 4294967294, %v86_v6  ;;  %v1073_v6 = vld [vmem:[%s2158_s0 + $0x28] sm:$0xff] }
  0x2f   :  { %vm1064_vm6 = vcmp.lt.s32.totalorder %v1063_v7, 0 }
  0x30   :  { %v89_v10 = vsel %vm1064_vm6, 0, %v1063_v7 }
  0x31   :  { %v90_v11 = vsub.s32 32, %v89_v10  ;;  %v91_v12 = vshll.u32 %v82_v63, %v89_v10  ;;  %v94_v13 = vsub.s32 4294967266, %v89_v10 }
  0x33   :  { %v92_v14 = vshrl.u32 %v74_v8, %v90_v11  ;;  %v95_v15 = vadd.s32 127, %v94_v13  ;;  %v1074_v11 = vld [vmem:[%s2158_s0 + $0x30] sm:$0xff] }
  0x35   :  { %v93_v16 = vor.u32 %v92_v14, %v91_v12  ;;  %v96_v17 = vshll.u32 %v95_v15, 23 }
  0x37   :  { %v97_v18 = vor.u32 4788187, %v96_v17  ;;  %v100_v19 = vcvt.s32.f32 %v93_v16 }
  0x39   :  { %v98_v20 = vand.u32 2147483647, %v97_v18 }
  0x3b   :  { %v101_v21 = vmul.f32 %v100_v19, %v98_v20  ;;  %v1071_v20 = vld [vmem:[%s2158_s0 + $0x18] sm:$0xff] }
  0x3d   :  { %v102_v23 = vxor.u32 2147483648, %v101_v21 }
  0x3f   :  { %v103_v24 = vsel %vm20_vm7, %v102_v23, %v101_v21  ;;  %v2161_v21 = vmov 0.0  }
  0x40   :  { %v106_v27 = vsel %vm19_vm8, %v1557_v2, %v103_v24 }
  0x41   :  { %1296 = vcosq.f32 %v106_v27 }
  0x42   :  { %1298 = vsinq.f32 %v106_v27 }
  0x4b   :  { %v1297_v32 = vpop.eup %1296 }
  0x4c   :  { %v1299_v33 = vpop.eup %1298  ;;  %v118_v34 = vxor.u32 2147483648, %v1297_v32 }
  0x4d   :  { %v115_v35 = vxor.u32 2147483648, %v1299_v33 }
  0x4e   :  { %v222_v5 = vsel %vm220_vm9, %v118_v34, %v1299_v33  ;;  %v119_v36 = vsel %vm117_vm10, %v118_v34, %v1299_v33 }
  0x4f   :  { %v219_v37 = vsel %vm217_vm11, %v1297_v32, %v115_v35  ;;  %v116_v38 = vsel %vm114_vm12, %v1297_v32, %v115_v35 }
  0x50   :  { %v223_v39 = vsel %vm216_vm13, %v219_v37, %v222_v5  ;;  %v120_v40 = vsel %vm113_vm14, %v116_v38, %v119_v36 }
  0x51   :  { %v224_v41 = vsel %vm110_vm15, nan, %v223_v39  ;;  %v121_v42 = vsel %vm110_vm15, nan, %v120_v40 }
  0x52   :  { %240 = vperm.xlu0 %1288, %v224_v41  }
  0x56   :  { %246 = vperm.xlu0 %1288, %v121_v42  }
  0x5a   :  { %1291 = vset.pattern.permute.xlu0 %v1513_v26 }
  0x5b   :  { %258 = vperm.xlu0 %1291, %v1557_v2  }
  0x5f   :  { %1293 = vset.pattern.permute.xlu0 %v1506_v1 }
  0x60   :  { %284 = vperm.xlu0 %1293, %v1566_v9  }
  0x64   :  { %1295 = vset.pattern.permute.xlu0 %v1505_v0 }
  0x81   :  { %v267_v26 = vpop.permute.xlu1 %266 }
  0x86   :  { %v254_v51 = vpop.permute.xlu1 %253 }
  0x8a   :  { %v1601_v53 = vpop.permute.xlu1 %278 }
  0x8f   :  { %v1606_v58 = vpop.permute.xlu1 %289 }
  0x94   :  { %v1618_v13 = vpop.permute.xlu1 %295 }
  0xd1   :  { %v241_v43 = vpop.permute.xlu0 %240 }
  0xd2   :  { %v262_v47 = vmul.f32 %v1070_v44, %v241_v43  ;;  %v243_v0 = vmul.f32 %v241_v43, %v225_v45 }
  0xd5   :  { %v247_v46 = vpop.permute.xlu0 %246 }
  0xd6   :  { %v263_v48 = vmul.f32 %v247_v46, %v225_v45  ;;  %v249_v9 = vmul.f32 %v1070_v44, %v247_v46 }
  0xd8   :  { %v264_v49 = vsub.f32 %v262_v47, %v263_v48  ;;  %v250_v52 = vadd.f32 %v249_v9, %v243_v0 }
  0xda   :  { %v269_v50 = vadd.f32 %v267_v26, %v264_v49  ;;  %v259_v54 = vpop.permute.xlu0 %258  ;;  %v256_v57 = vadd.f32 %v254_v51, %v250_v52  ;;  %v313_v31 = vsub.f32 0.0, %v250_v52 }
  0xdb   :  { %v261_v56 = vadd.f32 %v1069_v55, %v259_v54 }
  0xdc   :  { %v270_v1 = vmax.f32 %v269_v50, 0.0001  ;;  %v281_v62 = vmul.f32 %v1601_v53, %v256_v57  ;;  %vm303_vm0 = vcmp.ge.f32.partialorder %v269_v50, 0.0001 }
  0xdd   :  { %v292_v61 = vmul.f32 %v1606_v58, %v261_v56  ;;  %v304_v22 = vsel %vm303_vm0, 1.0, %v2161_v21 }
  0xde   :  { %1300 = vrcp.f32 %v270_v1  ;;  %v306_v7 = vsub.f32 0.0, %v281_v62 }
  0xdf   :  { %v310_v4 = vsub.f32 0.0, %v292_v61  ;;  %v1620_v15 = vpop.permute.xlu0 %284 }
  0xe8   :  { %v1301_v59 = vpop.eup %1300 }
  0xe9   :  { %v272_v60 = vmul.f32 %v1301_v59, %v270_v1 }
  0xeb   :  { %v273_v63 = vsub.f32 2.0, %v272_v60 }
  0xed   :  { %v274_v3 = vmul.f32 %v1301_v59, %v273_v63 }
  0xef   :  { %v275_v8 = vmul.f32 %v274_v3, %v274_v3  ;;  %v305_v10 = vmul.f32 %v1601_v53, %v274_v3  ;;  %v309_v12 = vmul.f32 %v1606_v58, %v274_v3  ;;  %v293_v14 = vmul.f32 %v292_v61, %v274_v3 }
  0xf0   :  { %v282_v16 = vmul.f32 %v281_v62, %v274_v3 }
  0xf1   :  { %v307_v17 = vmul.f32 %v306_v7, %v275_v8  ;;  %v314_v18 = vmul.f32 %v1073_v6, %v305_v10  ;;  %v311_v19 = vmul.f32 %v310_v4, %v275_v8  ;;  %v320_v23 = vmul.f32 %v1074_v11, %v309_v12 }
  0xf2   :  { %v298_v24 = vadd.f32 %v1618_v13, %v293_v14  ;;  %v287_v25 = vadd.f32 %v1620_v15, %v282_v16  ;;  %v316_v40 = vmul.f32 %v305_v10, %v264_v49 }
  0xf3   :  { %v308_v27 = vmul.f32 %v307_v17, %v304_v22  ;;  %v312_v28 = vmul.f32 %v311_v19, %v304_v22  ;;  %v324_v30 = vmul.f32 %v314_v18, %v314_v18  ;;  %v333_v5 = vmul.f32 %v320_v23, %v320_v23 }
  0xf4   :  { %v299_v32 = vsub.f32 %v287_v25, %v1071_v20  ;;  %v301_v35 = vsub.f32 %v298_v24, %v1072_v29  ;;  %v1632_v24 = vmov 2.0   ;;  %v1634_v25 = vmov 30.0  }
  0xf5   :  { %325 = vadd.xlane.f32.xlu1 %v324_v30  ;;  %v315_v33 = vmul.f32 %v1073_v6, %v308_v27  ;;  %v317_v34 = vmul.f32 %v313_v31, %v308_v27  ;;  %v322_v36 = vmul.f32 %v313_v31, %v312_v28  ;;  %v321_v39 = vmul.f32 %v1074_v11, %v312_v28 }
  0xf6   :  { %v300_v37 = vmul.f32 %v1073_v6, %v299_v32  ;;  %v302_v41 = vmul.f32 %v1074_v11, %v301_v35  ;;  %v2164_v27 = vmov %v1557_v2  ;;  %v2165_v28 = vmov %v1557_v2 }
  0xf7   :  { %v327_v38 = vmul.f32 %v315_v33, %v314_v18  ;;  %v318_v42 = vadd.f32 %v317_v34, %v316_v40  ;;  %v336_v43 = vmul.f32 %v321_v39, %v320_v23  ;;  %v323_v45 = vmul.f32 %v1074_v11, %v322_v36 }
  0xf8   :  { %v357_v44 = vmul.f32 %v314_v18, %v300_v37  ;;  %v360_v46 = vmul.f32 %v320_v23, %v302_v41  ;;  %v342_v47 = vmul.f32 %v315_v33, %v315_v33  ;;  %v343_v26 = vmul.f32 %v321_v39, %v321_v39 }
  0xf9   :  { %334 = vadd.xlane.f32.xlu1 %v333_v5  ;;  %328 = vadd.xlane.f32.xlu0 %v327_v38  ;;  %v319_v48 = vmul.f32 %v1073_v6, %v318_v42  ;;  %v339_v50 = vmul.f32 %v323_v45, %v320_v23  ;;  %v363_v1 = vmul.f32 %v315_v33, %v300_v37 }
  0xfa   :  { %v364_v51 = vmul.f32 %v321_v39, %v302_v41  ;;  %v344_v9 = vadd.f32 %v343_v26, %v342_v47  ;;  %v348_v52 = vmul.f32 %v323_v45, %v321_v39  ;;  %v373_v57 = vmul.f32 %v300_v37, %v300_v37 }
  0xfb   :  { %v347_v0 = vmul.f32 %v319_v48, %v315_v33  ;;  %v330_v54 = vmul.f32 %v319_v48, %v314_v18  ;;  %v352_v56 = vmul.f32 %v319_v48, %v319_v48  ;;  %v374_v59 = vmul.f32 %v302_v41, %v302_v41 }
  0xfc   :  { %v365_v49 = vadd.f32 %v364_v51, %v363_v1  ;;  %v353_v60 = vmul.f32 %v323_v45, %v323_v45  ;;  %v368_v63 = vmul.f32 %v319_v48, %v300_v37  ;;  %v369_v3 = vmul.f32 %v323_v45, %v302_v41 }
  0xfd   :  { %337 = vadd.xlane.f32.xlu0 %v336_v43  ;;  %358 = vadd.xlane.f32.xlu1 %v357_v44  ;;  %v349_v55 = vadd.f32 %v348_v52, %v347_v0  ;;  %v375_v62 = vadd.f32 %v374_v59, %v373_v57  ;;  %v2166_v29 = vmov %v1557_v2 }
  0xfe   :  { %v354_v61 = vadd.f32 %v353_v60, %v352_v56  ;;  %v370_v4 = vadd.f32 %v369_v3, %v368_v63 }
 0x101   :  { %361 = vadd.xlane.f32.xlu0 %v360_v46  ;;  %340 = vadd.xlane.f32.xlu1 %v339_v50 }
 0x105   :  { %345 = vadd.xlane.f32.xlu0 %v344_v9  ;;  %366 = vadd.xlane.f32.xlu1 %v365_v49 }
 0x109   :  { %331 = vadd.xlane.f32.xlu0 %v330_v54  ;;  %350 = vadd.xlane.f32.xlu1 %v349_v55 }
 0x10d   :  { %355 = vadd.xlane.f32.xlu0 %v354_v61  ;;  %376 = vadd.xlane.f32.xlu1 %v375_v62 }
 0x111   :  { %371 = vadd.xlane.f32.xlu0 %v370_v4 }
 0x182   :  { %v326_v6 = vpop.xlane.xlu1 %325  }
 0x186   :  { %v335_v7 = vpop.xlane.xlu1 %334   ;;  %v329_v8 = vpop.xlane.xlu0 %328  }
 0x18a   :  { %v338_v10 = vpop.xlane.xlu0 %337   ;;  %v359_v11 = vpop.xlane.xlu1 %358  }
 0x18e   :  { %v362_v12 = vpop.xlane.xlu0 %361   ;;  %v341_v14 = vpop.xlane.xlu1 %340  }
 0x192   :  { %v346_v16 = vpop.xlane.xlu0 %345   ;;  %v367_v17 = vpop.xlane.xlu1 %366  }
 0x196   :  { %v332_v18 = vpop.xlane.xlu0 %331   ;;  %v351_v19 = vpop.xlane.xlu1 %350  }
 0x19a   :  { %v356_v20 = vpop.xlane.xlu0 %355   ;;  %v377_v22 = vpop.xlane.xlu1 %376  }
 0x19e   :  { %v372_v23 = vpop.xlane.xlu0 %371  }
 0x19f LB: > { %v1516_v30 = vmov 3   ;;  %1307 = vrcp.f32 %v1427_v25  ;;  %v404_v31 = vmax.f32 %v1483_v6, 1e-06  ;;  %v411_v38 = vmax.f32 %v1471_v7, 1e-06  ;;  %s383_s5 = sadd.s32 1, %s1503_s5   ;;  %s1503_s5 = sphi %s1676_s5, %s383_s5   ;;  %v1499_v2 = vphi %v1557_v2, %v2203_v2   ;;  %v1495_v29 = vphi %v2166_v29, %v2202_v29   ;;  %v1491_v28 = vphi %v2165_v28, %v2201_v28   ;;  %v1487_v27 = vphi %v2164_v27, %v2200_v27   ;;  %v1483_v6 = vphi %v326_v6, %v2199_v6   ;;  %v1479_v8 = vphi %v329_v8, %v2198_v8   ;;  %v1475_v18 = vphi %v332_v18, %v2197_v18   ;;  %v1471_v7 = vphi %v335_v7, %v2196_v7   ;;  %v1467_v10 = vphi %v338_v10, %v2195_v10   ;;  %v1463_v14 = vphi %v341_v14, %v2194_v14   ;;  %v1459_v16 = vphi %v346_v16, %v2193_v16   ;;  %v1455_v19 = vphi %v351_v19, %v2192_v19   ;;  %v1451_v20 = vphi %v356_v20, %v2191_v20   ;;  %v1447_v11 = vphi %v359_v11, %v2190_v11   ;;  %v1443_v12 = vphi %v362_v12, %v2189_v12   ;;  %v1439_v17 = vphi %v367_v17, %v2188_v17   ;;  %v1435_v23 = vphi %v372_v23, %v2187_v23   ;;  %v1431_v22 = vphi %v377_v22, %v2186_v22   ;;  %v1427_v25 = vphi %v1634_v25, %v937_v25   ;;  %v1423_v24 = vphi %v1632_v24, %v2185_v24  }
 0x1a0   : > { %1302 = vset.pattern.permute.xlu0 %v1516_v30  ;;  %v417_v49 = vmax.f32 %v1459_v16, 1e-06  ;;  %p2024_p0 = scmp.ge.s32.totalorder %s383_s5, 10  }
 0x1a1   : > { %v405_v32 = vmin.f32 %v404_v31, 1e+32  ;;  %v412_v40 = vmin.f32 %v411_v38, 1e+32 }
 0x1a2   : > { %v418_v0 = vmin.f32 %v417_v49, 1e+32 }
 0x1a9   : > { %v1308_v33 = vpop.eup %1307 }
 0x1aa   : > { %v407_v34 = vmul.f32 %v1308_v33, %v405_v32  ;;  %v413_v44 = vmul.f32 %v1308_v33, %v412_v40  ;;  %v419_v54 = vmul.f32 %v1308_v33, %v418_v0 }
 0x1ac   : > { %v408_v35 = vadd.f32 1e-05, %v407_v34  ;;  %v414_v46 = vadd.f32 1e-05, %v413_v44  ;;  %v420_v59 = vadd.f32 1e-05, %v419_v54 }
 0x1ae   : > { %v409_v5 = vmax.f32 %v408_v35, 1e-05  ;;  %v415_v47 = vmax.f32 %v414_v46, 1e-05  ;;  %v421_v62 = vmax.f32 %v420_v59, 1e-05 }
 0x1b0   : > { %v410_v36 = vadd.f32 %v1483_v6, %v409_v5  ;;  %v416_v48 = vadd.f32 %v1471_v7, %v415_v47  ;;  %v422_v3 = vadd.f32 %v1459_v16, %v421_v62 }
 0x1b2   : > { %v429_v37 = vmax.f32 %v410_v36, 1e-12  ;;  %v423_v36 = vmax.f32 %v1451_v20, 1e-06 }
 0x1b4   : > { %1309 = vrsqrt.f32 %v429_v37  ;;  %vm432_vm1 = vcmp.eq.f32.partialorder %v429_v37, inf  ;;  %v435_v41 = vand.u32 2147483648, %v429_v37  ;;  %vm434_vm2 = vcmp.eq.f32.partialorder %v429_v37, 0.0 }
 0x1b5   : > { %v424_v38 = vmin.f32 %v423_v36, 1e+32 }
 0x1b7   : > { %v425_v40 = vmul.f32 %v1308_v33, %v424_v38 }
 0x1be   : > { %v1310_v39 = vpop.eup %1309 }
 0x1bf   : > { %v431_v42 = vmul.f32 %v1310_v39, %v429_v37 }
 0x1c1   : > { %v433_v43 = vsel %vm432_vm1, %v429_v37, %v431_v42 }
 0x1c2   : > { %v436_v45 = vsel %vm434_vm2, %v435_v41, %v433_v43  ;;  %v426_v43 = vadd.f32 1e-05, %v425_v40 }
 0x1c3   : > { %1311 = vrcp.f32 %v436_v45 }
 0x1cd   : > { %v1745_v26 = vpop.eup %1311 }
 0x1ce   : > { %v1749_v50 = vmul.f32 0.0, %v1745_v26  ;;  %v1756_v60 = vmul.f32 %v1479_v8, %v1745_v26  ;;  %v1774_v39 = vmul.f32 %v1475_v18, %v1745_v26  ;;  %v1790_v59 = vmul.f32 %v1447_v11, %v1745_v26 }
 0x1d0   : > { %v442_v1 = vmul.f32 %v1749_v50, %v1749_v50  ;;  %v454_v63 = vmul.f32 %v1756_v60, %v1749_v50  ;;  %v460_v30 = vmul.f32 %v1756_v60, %v1756_v60  ;;  %v457_v41 = vmul.f32 %v1774_v39, %v1749_v50 }
 0x1d1   : > { %v499_v36 = vmul.f32 %v1790_v59, %v1756_v60 }
 0x1d2   : > { %v443_v51 = vsub.f32 %v416_v48, %v442_v1  ;;  %v455_v4 = vsub.f32 %v1467_v10, %v454_v63  ;;  %v461_v34 = vsub.f32 %v422_v3, %v460_v30  ;;  %v458_v44 = vsub.f32 %v1463_v14, %v457_v41 }
 0x1d3   : > { %v427_v48 = vmax.f32 %v426_v43, 1e-05  ;;  %v504_v43 = vmul.f32 %v1790_v59, %v1774_v39 }
 0x1d4   : > { %v444_v9 = vmax.f32 %v443_v51, 1e-12 }
 0x1d5   : > { %v428_v33 = vadd.f32 %v1451_v20, %v427_v48  ;;  %v505_v48 = vsub.f32 %v1435_v23, %v504_v43 }
 0x1d6   : > { %1313 = vrsqrt.f32 %v444_v9  ;;  %vm447_vm3 = vcmp.eq.f32.partialorder %v444_v9, inf  ;;  %v450_v55 = vand.u32 2147483648, %v444_v9  ;;  %vm449_vm4 = vcmp.eq.f32.partialorder %v444_v9, 0.0 }
 0x1e0   : > { %v1314_v52 = vpop.eup %1313 }
 0x1e1   : > { %v446_v56 = vmul.f32 %v1314_v52, %v444_v9  ;;  %v479_v52 = vmul.f32 %v1774_v39, %v1774_v39 }
 0x1e3   : > { %v448_v57 = vsel %vm447_vm3, %v444_v9, %v446_v56  ;;  %v474_v9 = vmul.f32 %v1774_v39, %v1756_v60 }
 0x1e4   : > { %v451_v61 = vsel %vm449_vm4, %v450_v55, %v448_v57  ;;  %v480_v55 = vsub.f32 %v428_v33, %v479_v52  ;;  %v2162_v57 = vmov 2  }
 0x1e5   : > { %1315 = vrcp.f32 %v451_v61  ;;  %v475_v49 = vsub.f32 %v1455_v19, %v474_v9  ;;  %1303 = vset.pattern.permute.xlu1 %v2162_v57 }
 0x1ef   : > { %v1764_v31 = vpop.eup %1315 }
 0x1f0   : > { %v1767_v32 = vmul.f32 %v1764_v31, %v455_v4  ;;  %v459_v1 = vmul.f32 %v1764_v31, %v458_v44  ;;  %v496_v4 = vmul.f32 %v1790_v59, %v1749_v50 }
 0x1f2   : > { %v462_v35 = vmul.f32 %v1767_v32, %v1767_v32  ;;  %v476_v0 = vmul.f32 %v459_v1, %v1767_v32  ;;  %v481_v56 = vmul.f32 %v459_v1, %v459_v1 }
 0x1f4   : > { %v463_v5 = vsub.f32 %v461_v34, %v462_v35  ;;  %v477_v54 = vsub.f32 %v475_v49, %v476_v0  ;;  %v482_v63 = vsub.f32 %v480_v55, %v481_v56  ;;  %v497_v35 = vsub.f32 %v1443_v12, %v496_v4 }
 0x1f6   : > { %v464_v37 = vmax.f32 %v463_v5, 1e-12  ;;  %v498_v5 = vmul.f32 %v1764_v31, %v497_v35 }
 0x1f8   : > { %1317 = vrsqrt.f32 %v464_v37  ;;  %vm467_vm5 = vcmp.eq.f32.partialorder %v464_v37, inf  ;;  %v470_v45 = vand.u32 2147483648, %v464_v37  ;;  %vm469_vm6 = vcmp.eq.f32.partialorder %v464_v37, 0.0 }
 0x1f9   : > { %v501_v38 = vmul.f32 %v498_v5, %v1767_v32 }
 0x202   : > { %v1318_v42 = vpop.eup %1317 }
 0x203   : > { %v466_v46 = vmul.f32 %v1318_v42, %v464_v37 }
 0x205   : > { %v468_v47 = vsel %vm467_vm5, %v464_v37, %v466_v46  ;;  %v500_v37 = vsub.f32 %v1439_v17, %v499_v36 }
 0x206   : > { %v471_v51 = vsel %vm469_vm6, %v470_v45, %v468_v47 }
 0x207   : > { %1319 = vrcp.f32 %v471_v51  ;;  %v502_v42 = vsub.f32 %v500_v37, %v501_v38  ;;  %v506_v51 = vmul.f32 %v498_v5, %v459_v1 }
 0x209   : > { %v507_v9 = vsub.f32 %v505_v48, %v506_v51 }
 0x211   : > { %v1320_v61 = vpop.eup %1319 }
 0x212   : > { %v478_v62 = vmul.f32 %v1320_v61, %v477_v54  ;;  %v503_v47 = vmul.f32 %v1320_v61, %v502_v42 }
 0x214   : > { %v483_v3 = vmul.f32 %v478_v62, %v478_v62  ;;  %v508_v33 = vmul.f32 %v503_v47, %v478_v62 }
 0x216   : > { %v484_v30 = vsub.f32 %v482_v63, %v483_v3  ;;  %v509_v49 = vsub.f32 %v507_v9, %v508_v33  ;;  %v1519_v9 = vmov 683565275  }
 0x218   : > { %v485_v34 = vmax.f32 %v484_v30, 1e-12 }
 0x21a   : > { %1321 = vrsqrt.f32 %v485_v34  ;;  %vm488_vm7 = vcmp.eq.f32.partialorder %v485_v34, inf  ;;  %v491_v41 = vand.u32 2147483648, %v485_v34  ;;  %vm490_vm8 = vcmp.eq.f32.partialorder %v485_v34, 0.0 }
 0x224   : > { %v1322_v40 = vpop.eup %1321 }
 0x225   : > { %v487_v44 = vmul.f32 %v1322_v40, %v485_v34 }
 0x227   : > { %v489_v45 = vsel %vm488_vm7, %v485_v34, %v487_v44 }
 0x228   : > { %v492_v46 = vsel %vm490_vm8, %v491_v41, %v489_v45 }
 0x229   : > { %1323 = vrcp.f32 %v492_v46 }
 0x233   : > { %v1324_v0 = vpop.eup %1323 }
 0x234   : > { %v510_v52 = vmul.f32 %v1324_v0, %v509_v49  ;;  %v1520_v49 = vmov 2475754826  }
 0x236   : > { %v511_v54 = vmul.f32 %v1324_v0, %v510_v52  ;;  %v1521_v52 = vmov 2131351028  }
 0x238   : > { %v1803_v55 = vsub.f32 0.0, %v511_v54  ;;  %v512_v56 = vmul.f32 %v511_v54, %v478_v62  ;;  %v517_v38 = vmul.f32 %v511_v54, %v459_v1  ;;  %v524_v51 = vmul.f32 %v511_v54, %v1774_v39 }
 0x239   : > { %v1524_v39 = vmov 1326507024  }
 0x23a   : > { %v1807_v63 = vadd.f32 %v1487_v27, %v1803_v55  ;;  %v513_v3 = vsub.f32 %v503_v47, %v512_v56  ;;  %v1518_v47 = vmov 0  }
 0x23c   : > { %v538_v4 = vand.u32 2139095040, %v1807_v63  ;;  %v2163_v30 = vand.u32 2147483647, %v1807_v63  ;;  %v514_v34 = vmul.f32 %v1320_v61, %v513_v3  ;;  %v1522_v3 = vmov 2102212464  }
 0x23d   : > { %vm537_vm0 = vcmp.lt.s32.totalorder %v1807_v63, 0  ;;  %vm627_vm8 = vweird.f32 %v1807_v63 }
 0x23e   : > { %v539_v35 = vshrl.u32 %v538_v4, 23  ;;  %v1811_v36 = vsub.f32 0.0, %v514_v34  ;;  %v515_v37 = vmul.f32 %v514_v34, %v1767_v32  ;;  %v542_v62 = vand.u32 8388607, %v2163_v30 }
 0x240   : > { %v1075_v40 = vadd.s32 4294967169, %v539_v35  ;;  %v1818_v41 = vadd.f32 %v1491_v28, %v1811_v36  ;;  %v516_v42 = vsub.f32 %v498_v5, %v515_v37  ;;  %v543_v61 = vor.u32 8388608, %v542_v62 }
 0x242   : > { %v545_v43 = vadd.s32 1, %v1075_v40  ;;  %779 = vperm.xlu1 %1303, %v1818_v41   ;;  %v518_v44 = vsub.f32 %v516_v42, %v517_v38  ;;  %v583_v37 = vshll.u32 %v543_v61, 8  ;;  %v522_v38 = vmul.f32 %v514_v34, %v1756_v60 }
 0x244   : > { %vm546_vm9 = vcmp.gt.s32.totalorder %v545_v43, 0  ;;  %v1822_v46 = vmul.f32 %v1764_v31, %v518_v44  ;;  %v1523_v31 = vmov 920167782  }
 0x245   : > { %v547_v45 = vsel %vm546_vm9, %v545_v43, 0 }
 0x246   : > { %v549_v32 = vand.u32 31, %v547_v45  ;;  %v548_v1 = vshrl.u32 %v547_v45, 5  ;;  %1304 = vset.pattern.permute.xlu1 %v1518_v47  ;;  %v520_v48 = vmul.f32 %v1822_v46, %v1749_v50 }
 0x248   : > { %v550_v5 = vsub.s32 32, %v549_v32  ;;  %v552_v33 = vshll.u32 %v1519_v9, %v549_v32  ;;  %v555_v0 = vshll.u32 %v1520_v49, %v549_v32  ;;  %v558_v56 = vshll.u32 %v1521_v52, %v549_v32 }
 0x249   : > { %v561_v4 = vshll.u32 %v1522_v3, %v549_v32  ;;  %v564_v35 = vshll.u32 %v1523_v31, %v549_v32  ;;  %vm567_vm10 = vcmp.lt.s32.totalorder %v548_v1, 1  ;;  %vm570_vm11 = vcmp.lt.s32.totalorder %v548_v1, 4 }
 0x24a   : > { %v551_v40 = vshrl.u32 %v1519_v9, %v550_v5  ;;  %v553_v62 = vshrl.u32 %v1520_v49, %v550_v5  ;;  %v556_v42 = vshrl.u32 %v1521_v52, %v550_v5  ;;  %v559_v50 = vshrl.u32 %v1522_v3, %v550_v5 }
 0x24b   : > { %v562_v43 = vshrl.u32 %v1523_v31, %v550_v5  ;;  %v565_v54 = vshrl.u32 %v1524_v39, %v550_v5  ;;  %v521_v21 = vsub.f32 %v1790_v59, %v520_v48  ;;  %vm568_vm12 = vcmp.lt.s32.totalorder %v548_v1, 2 }
 0x24c   : > { %v554_v44 = vor.u32 %v553_v62, %v552_v33  ;;  %v557_v45 = vor.u32 %v556_v42, %v555_v0  ;;  %v560_v47 = vor.u32 %v559_v50, %v558_v56  ;;  %vm569_vm13 = vcmp.lt.s32.totalorder %v548_v1, 3 }
 0x24d   : > { %v563_v57 = vor.u32 %v562_v43, %v561_v4  ;;  %v566_v30 = vor.u32 %v565_v54, %v564_v35  ;;  %v523_v3 = vsub.f32 %v521_v21, %v522_v38 }
 0x24e   : > { %v571_v61 = vsel %vm567_vm10, %v551_v40, %v554_v44  ;;  %v572_v60 = vsel %vm570_vm11, %v560_v47, 2102212464  ;;  %v575_v34 = vsel %vm567_vm10, %v554_v44, %v557_v45  ;;  %v579_v32 = vsel %vm567_vm10, %v557_v45, %v560_v47 }
 0x24f   : > { %v573_v9 = vsel %vm569_vm13, %v557_v45, %v572_v60  ;;  %v576_v49 = vsel %vm570_vm11, %v563_v57, 920167782  ;;  %v580_v52 = vsel %vm570_vm11, %v566_v30, 1326507024  ;;  %v525_v56 = vsub.f32 %v523_v3, %v524_v51 }
 0x250   : > { %v577_v5 = vsel %vm569_vm13, %v560_v47, %v576_v49  ;;  %v581_v31 = vsel %vm569_vm13, %v563_v57, %v580_v52  ;;  %v574_v39 = vsel %vm568_vm12, %v571_v61, %v573_v9  ;;  %vm954_vm13 = vcmask (%p2024_p0), 7168  }
 0x251   : > { %v578_v33 = vsel %vm568_vm12, %v575_v34, %v577_v5  ;;  %v582_v0 = vsel %vm568_vm12, %v579_v32, %v581_v31  ;;  %v526_v1 = vmul.f32 %v1745_v26, %v525_v56  ;;  %v590_v35 = vmul.u32 %v583_v37, %v574_v39 }
 0x252   : > { %v1829_v62 = vmul.u32.u64.low %v583_v37, %v582_v0  ;;  %v1830_v59 = vmul.u32.u64.high %v583_v37, %v582_v0, %v1829_v62  ;;  %v1832_v48 = vmul.u32.u64.low %v583_v37, %v578_v33  ;;  %v1833_v4 = vmul.u32.u64.high %v583_v37, %v578_v33, %v1832_v48 }
 0x253   : > { %v1836_v40 = vsub.f32 0.0, %v526_v1  ;;  %v2167_v0 = vand.u32 2147483647, %v1807_v63 }
 0x254   : > { %vm592_vm14 = vc.u32 %v1830_v59, %v1832_v48  ;;  %v593_v21 = vadd.s32 1, %v1833_v4  ;;  %v591_v45 = vadd.s32 %v1832_v48, %v1830_v59 }
 0x255   : > { %v1842_v57 = vadd.f32 %v1499_v2, %v1836_v40  ;;  %vm536_vm1 = vcmp.le.f32.partialorder %v2167_v0, 0.7853982 }
 0x256   : > { %v594_v30 = vsel %vm592_vm14, %v593_v21, %v1833_v4  ;;  %vm956_vm14 = vcmask (%p2024_p0), 15368  }
 0x257   : > { %v595_v51 = vadd.s32 %v594_v30, %v590_v35  ;;  %764 = vperm.xlu1 %1304, %v1842_v57  }
 0x259   : > { %v596_v38 = vadd.s32 536870912, %v595_v51 }
 0x25b   : > { %v597_v42 = vshrl.u32 %v596_v38, 30 }
 0x25d   : > { %v598_v50 = vshll.u32 %v597_v42, 30  ;;  %v621_v33 = vsub.s32 4, %v597_v42 }
 0x25f   : > { %v599_v26 = vsub.s32 %v595_v51, %v598_v50  ;;  %v622_v59 = vsel %vm537_vm0, %v621_v33, %v597_v42 }
 0x260   : > { %v624_v4 = vsel %vm536_vm1, 0, %v622_v59 }
 0x261   : > { %v601_v37 = vsub.s32 0, %v599_v26  ;;  %v628_v1 = vadd.s32 3, %v624_v4  ;;  %v732_v35 = vand.u32 3, %v624_v4  ;;  %v1083_v4 = vld [vmem:[%s2158_s0 + $0x8] sm:$0xff] }
 0x263   : > { %v1076_v43 = vmin.u32 %v601_v37, %v599_v26  ;;  %v629_v21 = vand.u32 3, %v628_v1  ;;  %vm737_vm2 = vcmp.eq.s32.totalorder %v732_v35, 2  ;;  %vm734_vm4 = vcmp.eq.s32.totalorder %v732_v35, 0 }
 0x264   : > { %vm733_vm6 = vcmp.lt.s32.totalorder %v732_v35, 2 }
 0x265   : > { %v603_v54 = vclz %v1076_v43  ;;  %vm634_vm3 = vcmp.eq.s32.totalorder %v629_v21, 2  ;;  %vm631_vm5 = vcmp.eq.s32.totalorder %v629_v21, 0  ;;  %vm630_vm7 = vcmp.lt.s32.totalorder %v629_v21, 2 }
 0x267   : > { %v1077_v44 = vadd.s32 4294967294, %v603_v54 }
 0x269   : > { %vm1078_vm15 = vcmp.lt.s32.totalorder %v1077_v44, 0 }
 0x26a   : > { %v606_v47 = vsel %vm1078_vm15, 0, %v1077_v44  ;;  %vm958_vm15 = vcmask (%p2024_p0), 23568  }
 0x26b   : > { %v607_v61 = vsub.s32 32, %v606_v47  ;;  %v608_v60 = vshll.u32 %v599_v26, %v606_v47  ;;  %v611_v34 = vsub.s32 4294967266, %v606_v47 }
 0x26d   : > { %v609_v32 = vshrl.u32 %v591_v45, %v607_v61  ;;  %v612_v9 = vadd.s32 127, %v611_v34  ;;  %v1853_v61 = vsub.f32 0.0, %v1822_v46  ;;  %v1525_v34 = vmov 1   ;;  %v742_v46 = vld [vmem:[%s2158_s0] sm:$0xff] }
 0x26f   : > { %v610_v49 = vor.u32 %v609_v32, %v608_v60  ;;  %v613_v52 = vshll.u32 %v612_v9, 23  ;;  %v1857_v60 = vadd.f32 %v1495_v29, %v1853_v61  ;;  %v2168_v32 = vmov 2  }
 0x271   : > { %v614_v3 = vor.u32 4788187, %v613_v52  ;;  %v617_v5 = vcvt.s32.f32 %v610_v49  ;;  %v1084_v49 = vld [vmem:[%s2158_s0 + $0x10] sm:$0xff] }
 0x273   : > { %v615_v31 = vand.u32 2147483647, %v614_v3 }
 0x275   : > { %v618_v39 = vmul.f32 %v617_v5, %v615_v31 }
 0x277   : > { %v619_v56 = vxor.u32 2147483648, %v618_v39 }
 0x279   : > { %v620_v62 = vsel %vm537_vm0, %v619_v56, %v618_v39  ;;  %vm960_vm0 = vcmask (%p2024_p0), 31768  }
 0x27a   : > { %v623_v48 = vsel %vm536_vm1, %v1807_v63, %v620_v62  ;;  %vm966_vm1 = vcmask (%p2024_p0), 39968  }
 0x27b   : > { %1325 = vcosq.f32 %v623_v48 }
 0x27c   : > { %1327 = vsinq.f32 %v623_v48 }
 0x285   : > { %v1326_v30 = vpop.eup %1325 }
 0x286   : > { %v1328_v51 = vpop.eup %1327  ;;  %v635_v38 = vxor.u32 2147483648, %v1326_v30 }
 0x287   : > { %v632_v50 = vxor.u32 2147483648, %v1328_v51 }
 0x288   : > { %v739_v42 = vsel %vm737_vm2, %v635_v38, %v1328_v51  ;;  %v636_v26 = vsel %vm634_vm3, %v635_v38, %v1328_v51  ;;  %vm968_vm2 = vcmask (%p2024_p0), 48168   ;;  %vm970_vm3 = vcmask (%p2024_p0), 56368  }
 0x289   : > { %v736_v37 = vsel %vm734_vm4, %v1326_v30, %v632_v50  ;;  %v633_v43 = vsel %vm631_vm5, %v1326_v30, %v632_v50  ;;  %vm972_vm4 = vcmask (%p2024_p0), 64568   ;;  %vm974_vm5 = vcmask (%p2024_p0), 72768  }
 0x28a   : > { %v740_v54 = vsel %vm733_vm6, %v736_v37, %v739_v42  ;;  %v637_v44 = vsel %vm630_vm7, %v633_v43, %v636_v26  ;;  %v1087_v37 = vld [vmem:[%s2158_s0 + $0x28] sm:$0xff]  ;;  %vm976_vm6 = vcmask (%p2024_p0), 80968   ;;  %vm978_vm7 = vcmask (%p2024_p0), 89168  }
 0x28b   : > { %v741_v45 = vsel %vm627_vm8, nan, %v740_v54  ;;  %v638_v47 = vsel %vm627_vm8, nan, %v637_v44  ;;  %vm980_vm8 = vcmask (%p2024_p0), 97368  }
 0x28c   : > { %751 = vperm.xlu0 %1302, %v741_v45  }
 0x290   : > { %757 = vperm.xlu0 %1302, %v638_v47  }
 0x294   : > { %1305 = vset.pattern.permute.xlu0 %v1525_v34 }
 0x295   : > { %770 = vperm.xlu0 %1305, %v1857_v60  }
 0x299   : > { %1306 = vset.pattern.permute.xlu0 %v2168_v32  ;;  %v1085_v32 = vld [vmem:[%s2158_s0 + $0x18] sm:$0xff] }
 0x2c1   : > { %v780_v39 = vpop.permute.xlu1 %779 }
 0x2d6   : > { %v765_v48 = vpop.permute.xlu1 %764 }
 0x30b   : > { %v752_v9 = vpop.permute.xlu0 %751 }
 0x30c   : > { %v774_v3 = vmul.f32 %v1084_v49, %v752_v9  ;;  %v754_v62 = vmul.f32 %v752_v9, %v742_v46 }
 0x30f   : > { %v758_v52 = vpop.permute.xlu0 %757 }
 0x310   : > { %v775_v5 = vmul.f32 %v758_v52, %v742_v46  ;;  %v760_v56 = vmul.f32 %v1084_v49, %v758_v52  ;;  %v1086_v52 = vld [vmem:[%s2158_s0 + $0x20] sm:$0xff] }
 0x312   : > { %v776_v31 = vsub.f32 %v774_v3, %v775_v5  ;;  %v761_v59 = vadd.f32 %v760_v56, %v754_v62  ;;  %v1088_v62 = vld [vmem:[%s2158_s0 + $0x30] sm:$0xff] }
 0x314   : > { %v782_v33 = vadd.f32 %v780_v39, %v776_v31  ;;  %v771_v1 = vpop.permute.xlu0 %770  ;;  %v767_v35 = vadd.f32 %v765_v48, %v761_v59 }
 0x315   : > { %v773_v21 = vadd.f32 %v1083_v4, %v771_v1 }
 0x316   : > { %v783_v0 = vmax.f32 %v782_v33, 0.0001  ;;  %v789_v38 = vmul.f32 %v767_v35, %v1601_v53  ;;  %vm799_vm9 = vcmp.ge.f32.partialorder %v782_v33, 0.0001 }
 0x317   : > { %v792_v50 = vmul.f32 %v773_v21, %v1606_v58 }
 0x318   : > { %1329 = vrcp.f32 %v783_v0  ;;  %v802_v43 = vsub.f32 0.0, %v789_v38 }
 0x319   : > { %v806_v54 = vsub.f32 0.0, %v792_v50 }
 0x322   : > { %v1330_v30 = vpop.eup %1329 }
 0x323   : > { %v785_v51 = vmul.f32 %v1330_v30, %v783_v0  ;;  %v1526_v0 = vmov 0.0  }
 0x324   : > { %v800_v56 = vsel %vm799_vm9, 1.0, %v1526_v0  ;;  %vm982_vm9 = vcmask (%p2024_p0), 105568  }
 0x325   : > { %v786_v42 = vsub.f32 2.0, %v785_v51 }
 0x327   : > { %v787_v26 = vmul.f32 %v1330_v30, %v786_v42  ;;  %v809_v30 = vsub.f32 0.0, %v761_v59 }
 0x329   : > { %v801_v44 = vmul.f32 %v787_v26, %v1601_v53  ;;  %v788_v45 = vmul.f32 %v787_v26, %v787_v26  ;;  %v790_v47 = vmul.f32 %v789_v38, %v787_v26  ;;  %v793_v34 = vmul.f32 %v792_v50, %v787_v26 }
 0x32a   : > { %v805_v39 = vmul.f32 %v787_v26, %v1606_v58  ;;  %v2204_v53 = vmov (%p2024_p0), 0.0  }
 0x32b   : > { %v810_v9 = vmul.f32 %v1087_v37, %v801_v44  ;;  %v791_v49 = vadd.f32 %v790_v47, %v1620_v15  ;;  %v803_v46 = vmul.f32 %v802_v43, %v788_v45  ;;  %v794_v3 = vadd.f32 %v793_v34, %v1618_v13 }
 0x32c   : > { %v807_v5 = vmul.f32 %v806_v54, %v788_v45  ;;  %v816_v50 = vmul.f32 %v1088_v62, %v805_v39  ;;  %v812_v47 = vmul.f32 %v801_v44, %v776_v31 }
 0x32d   : > { %v795_v33 = vsub.f32 %v791_v49, %v1085_v32  ;;  %v820_v48 = vmul.f32 %v810_v9, %v810_v9  ;;  %v804_v4 = vmul.f32 %v803_v46, %v800_v56  ;;  %v797_v1 = vsub.f32 %v794_v3, %v1086_v52 }
 0x32e   : > { %v808_v35 = vmul.f32 %v807_v5, %v800_v56  ;;  %v829_v56 = vmul.f32 %v816_v50, %v816_v50 }
 0x32f   : > { %v796_v21 = vmul.f32 %v1087_v37, %v795_v33  ;;  %821 = vadd.xlane.f32.xlu0 %v820_v48  ;;  %v798_v51 = vmul.f32 %v1088_v62, %v797_v1  ;;  %v811_v43 = vmul.f32 %v1087_v37, %v804_v4  ;;  %v813_v26 = vmul.f32 %v809_v30, %v804_v4 }
 0x330   : > { %v817_v38 = vmul.f32 %v1088_v62, %v808_v35  ;;  %v818_v3 = vmul.f32 %v809_v30, %v808_v35 }
 0x331   : > { %v869_v42 = vmul.f32 %v796_v21, %v796_v21  ;;  %v870_v45 = vmul.f32 %v798_v51, %v798_v51  ;;  %v814_v32 = vadd.f32 %v813_v26, %v812_v47  ;;  %v856_v49 = vmul.f32 %v816_v50, %v798_v51 }
 0x332   : > { %v832_v54 = vmul.f32 %v817_v38, %v816_v50  ;;  %v838_v46 = vmul.f32 %v811_v43, %v811_v43  ;;  %v839_v52 = vmul.f32 %v817_v38, %v817_v38  ;;  %v823_v5 = vmul.f32 %v811_v43, %v810_v9 }
 0x333   : > { %v871_v34 = vadd.f32 %v870_v45, %v869_v42  ;;  %v815_v0 = vmul.f32 %v1087_v37, %v814_v32  ;;  %v819_v39 = vmul.f32 %v1088_v62, %v818_v3  ;;  %v853_v31 = vmul.f32 %v810_v9, %v796_v21 }
 0x334   : > { %833 = vadd.xlane.f32.xlu0 %v832_v54  ;;  %v840_v59 = vadd.f32 %v839_v52, %v838_v46  ;;  %v859_v62 = vmul.f32 %v811_v43, %v796_v21  ;;  %v860_v45 = vmul.f32 %v817_v38, %v798_v51  ;;  %v880_v32 = vmul.f32 %v1467_v10, %v1811_v36 }
 0x335   : > { %872 = vadd.xlane.f32.xlu1 %v871_v34  ;;  %v826_v33 = vmul.f32 %v815_v0, %v810_v9  ;;  %v848_v48 = vmul.f32 %v815_v0, %v815_v0  ;;  %v849_v44 = vmul.f32 %v819_v39, %v819_v39  ;;  %v864_v1 = vmul.f32 %v815_v0, %v796_v21 }
 0x336   : > { %v835_v42 = vmul.f32 %v819_v39, %v816_v50  ;;  %v865_v35 = vmul.f32 %v819_v39, %v798_v51  ;;  %v843_v30 = vmul.f32 %v815_v0, %v811_v43  ;;  %v844_v54 = vmul.f32 %v819_v39, %v817_v38 }
 0x337   : > { %v850_v4 = vadd.f32 %v849_v44, %v848_v48  ;;  %v861_v47 = vadd.f32 %v860_v45, %v859_v62  ;;  %v874_v9 = vmul.f32 %v1483_v6, %v1836_v40  ;;  %v875_v34 = vmul.f32 %v1479_v8, %v1811_v36 }
 0x338   : > { %857 = vadd.xlane.f32.xlu0 %v856_v49  ;;  %v866_v26 = vadd.f32 %v865_v35, %v864_v1  ;;  %v845_v37 = vadd.f32 %v844_v54, %v843_v30  ;;  %v879_v50 = vmul.f32 %v1471_v7, %v1853_v61  ;;  %v884_v49 = vmul.f32 %v1479_v8, %v1836_v40 }
 0x339   : > { %824 = vadd.xlane.f32.xlu1 %v823_v5  ;;  %v885_v21 = vmul.f32 %v1467_v10, %v1853_v61  ;;  %v876_v51 = vadd.f32 %v875_v34, %v874_v9  ;;  %v877_v38 = vmul.f32 %v1475_v18, %v1803_v55  ;;  %v882_v46 = vmul.f32 %v1463_v14, %v1803_v55 }
 0x33a   : > { %v881_v43 = vadd.f32 %v880_v32, %v879_v50  ;;  %v887_v3 = vmul.f32 %v1459_v16, %v1811_v36  ;;  %v891_v5 = vmul.f32 %v1475_v18, %v1836_v40  ;;  %v889_v39 = vmul.f32 %v1455_v19, %v1803_v55 }
 0x33b   : > { %v886_v52 = vadd.f32 %v885_v21, %v884_v49  ;;  %v878_v0 = vadd.f32 %v877_v38, %v876_v51  ;;  %v896_v44 = vmul.f32 %v1451_v20, %v1803_v55 }
 0x33c   : > { %841 = vadd.xlane.f32.xlu0 %v840_v59  ;;  %v892_v59 = vmul.f32 %v1463_v14, %v1853_v61 }
 0x33d   : > { %830 = vadd.xlane.f32.xlu1 %v829_v56  ;;  %v883_v56 = vadd.f32 %v882_v46, %v881_v43 }
 0x33e   : > { %v893_v48 = vadd.f32 %v892_v59, %v891_v5  ;;  %v938_v59 = vmul.f32 2.0, %v1423_v24 }
 0x33f   : > { %v901_v35 = vmul.f32 0.5, %v883_v56 }
 0x340   : > { %827 = vadd.xlane.f32.xlu0 %v826_v33  ;;  %v888_v33 = vadd.f32 %v887_v3, %v886_v52 }
 0x341   : > { %854 = vadd.xlane.f32.xlu1 %v853_v31  ;;  %v894_v31 = vmul.f32 %v1455_v19, %v1811_v36  ;;  %v902_v54 = vadd.f32 %v1443_v12, %v901_v35 }
 0x343   : > { %v895_v1 = vadd.f32 %v894_v31, %v893_v48  ;;  %v903_v45 = vmul.f32 %v902_v54, %v1853_v61 }
 0x344   : > { %851 = vadd.xlane.f32.xlu0 %v850_v4  ;;  %v890_v4 = vadd.f32 %v889_v39, %v888_v33 }
 0x345   : > { %836 = vadd.xlane.f32.xlu1 %v835_v42  ;;  %v898_v42 = vmul.f32 0.5, %v878_v0  ;;  %v897_v30 = vadd.f32 %v896_v44, %v895_v1 }
 0x347   : > { %v909_v9 = vmul.f32 0.5, %v897_v30 }
 0x348   : > { %867 = vadd.xlane.f32.xlu0 %v866_v26  ;;  %v899_v26 = vadd.f32 %v1447_v11, %v898_v42 }
 0x349   : > { %846 = vadd.xlane.f32.xlu1 %v845_v37  ;;  %v905_v37 = vmul.f32 0.5, %v890_v4  ;;  %v910_v32 = vadd.f32 %v1435_v23, %v909_v9 }
 0x34a   : > { %v900_v62 = vmul.f32 %v899_v26, %v1836_v40 }
 0x34b   : > { %v911_v21 = vmul.f32 %v910_v32, %v1803_v55 }
 0x34c   : > { %v904_v34 = vadd.f32 %v903_v45, %v900_v62 }
 0x34d   : > { %862 = vadd.xlane.f32.xlu1 %v861_v47  ;;  %v906_v47 = vadd.f32 %v1439_v17, %v905_v37 }
 0x34f   : > { %v907_v50 = vmul.f32 %v906_v47, %v1811_v36 }
 0x351   : > { %v908_v49 = vadd.f32 %v907_v50, %v904_v34 }
 0x353   : > { %v912_v51 = vadd.f32 %v911_v21, %v908_v49 }
 0x355   : > { %v913_v38 = vsub.f32 0.0, %v912_v51 }
 0x357   : > { %1331 = vrcp.f32 %v913_v38  ;;  %vm918_vm10 = vcmp.gt.f32.partialorder %v913_v38, 0.0 }
 0x361   : > { %v1332_v52 = vpop.eup %1331 }
 0x3bc   : > { %v822_v43 = vpop.xlane.xlu0 %821 }
 0x3c1   : > { %v834_v46 = vpop.xlane.xlu0 %833 }
 0x3c2   : > { %v873_v40 = vpop.xlane.xlu1 %872 }
 0x3c3   : > { %v914_v61 = vsub.f32 %v1431_v22, %v873_v40 }
 0x3c5   : > { %v858_v3 = vpop.xlane.xlu0 %857  ;;  %v916_v5 = vmul.f32 %v1332_v52, %v914_v61 }
 0x3c6   : > { %v825_v36 = vpop.xlane.xlu1 %824 }
 0x3c7   : > { %vm917_vm11 = vcmp.ge.f32.partialorder %v916_v5, 0.001  ;;  %v924_v0 = vmul.f32 2.0, %v916_v5 }
 0x3c8   : > { %vm1926_vm12 = vmand %vm917_vm11, %vm918_vm10  ;;  %vm984_vm10 = vcmask (%p2024_p0), 113768   ;;  %vm986_vm11 = vcmask (%p2024_p0), 130160  }
 0x3c9   : > { %v842_v55 = vpop.xlane.xlu0 %841  ;;  %v1934_v2 = vsel %vm1926_vm12, %v1842_v57, %v1499_v2   ;;  %v1940_v29 = vsel %vm1926_vm12, %v1857_v60, %v1495_v29   ;;  %v1946_v28 = vsel %vm1926_vm12, %v1818_v41, %v1491_v28   ;;  %v1952_v27 = vsel %vm1926_vm12, %v1807_v63, %v1487_v27  }
 0x3ca   : > { %v2171_v56 = vmov %v1934_v2  ;;  %v2172_v33 = vmov %v1940_v29  ;;  %v2173_v48 = vmov %v1946_v28  ;;  %v2174_v31 = vmov %v1952_v27  ;;  %v831_v28 = vpop.xlane.xlu1 %830 }
 0x3cb   : > { %v1089_v57 = vadd.f32 -1.0, %v924_v0  ;;  %v939_v2 = vsel %vm1926_vm12, 2.0, %v938_v59   ;;  %v1959_v6 = vsel %vm1926_vm12, %v822_v43, %v1483_v6   ;;  %v1964_v10 = vsel %vm1926_vm12, %v834_v46, %v1467_v10   ;;  %955 = vst.msk [vmem:[%s2159_s3] sm:$0xff] (%p2024_p0), %vm954_vm13, %v2171_v56 }
 0x3cc   : > { %v2175_v60 = vmov %v1959_v6  ;;  %v2176_v41 = vmov %v1964_v10  ;;  %v1969_v22 = vsel %vm1926_vm12, %v873_v40, %v1431_v22   ;;  %v1974_v12 = vsel %vm1926_vm12, %v858_v3, %v1443_v12   ;;  %957 = vst.msk [vmem:[%s2159_s3] sm:$0xff] (%p2024_p0), %vm956_vm14, %v2172_v33 }
 0x3cd   : > { %v2177_v63 = vmov %v1969_v22  ;;  %v2178_v44 = vmov %v1974_v12  ;;  %v941_v4 = vsel %vm1926_vm12, %v825_v36, %v1479_v8   ;;  %v1982_v16 = vsel %vm1926_vm12, %v842_v55, %v1459_v16   ;;  %v828_v10 = vpop.xlane.xlu0 %827  ;;  %962 = vst.msk [vmem:[%s2160_s4] sm:$0xff] (%p2024_p0), %vm954_vm13, %v2175_v60 }
 0x3ce   : > { %v2179_v1 = vmov %v1982_v16  ;;  %v926_v6 = vmul.f32 %v1089_v57, %v1089_v57  ;;  %v1987_v7 = vsel %vm1926_vm12, %v831_v28, %v1471_v7   ;;  %v942_v35 = vsel %vm1926_vm12, %v828_v10, %v1475_v18   ;;  %v855_v22 = vpop.xlane.xlu1 %854  ;;  %963 = vst.msk [vmem:[%s2160_s4] sm:$0xff] (%p2024_p0), %vm956_vm14, %v941_v4 }
 0x3cf   : > { %v2180_v42 = vmov %v1987_v7  ;;  %v1995_v11 = vsel %vm1926_vm12, %v855_v22, %v1447_v11   ;;  %v2186_v22 = vmov %v2177_v63  ;;  %v2195_v10 = vmov %v2176_v41  ;;  %964 = vst.msk [vmem:[%s2160_s4] sm:$0xff] (%p2024_p0), %vm958_vm15, %v942_v35  ;;  %959 = vst.msk [vmem:[%s2159_s3] sm:$0xff] (%p2024_p0), %vm958_vm15, %v2173_v48 }
 0x3d0   : > { %v927_v12 = vmul.f32 %v1089_v57, %v926_v6  ;;  %v2181_v30 = vmov %v1995_v11  ;;  %v2199_v6 = vmov %v2175_v60  ;;  %v2201_v28 = vmov %v2173_v48  ;;  %965 = vst.msk [vmem:[%s2160_s4] sm:$0xff] (%p2024_p0), %vm960_vm0, %v2180_v42  ;;  %961 = vst.msk [vmem:[%s2159_s3] sm:$0xff] (%p2024_p0), %vm960_vm0, %v2174_v31 }
 0x3d1   : > { %v852_v16 = vpop.xlane.xlu0 %851  ;;  %967 = vst.msk [vmem:[%s2160_s4] sm:$0xff] (%p2024_p0), %vm966_vm1, %v2176_v41 }
 0x3d2   : > { %v928_v8 = vsub.f32 1.0, %v927_v12  ;;  %v2000_v20 = vsel %vm1926_vm12, %v852_v16, %v1451_v20   ;;  %v837_v27 = vpop.xlane.xlu1 %836  ;;  %v2189_v12 = vmov %v2178_v44  ;;  %v2193_v16 = vmov %v2179_v1 }
 0x3d3   : > { %v2182_v26 = vmov %v2000_v20  ;;  %v945_v54 = vsel %vm1926_vm12, %v837_v27, %v1463_v14   ;;  %v2200_v27 = vmov %v2174_v31 }
 0x3d4   : > { %v929_v7 = vmax.f32 %v928_v8, 0.33333334  ;;  %v2198_v8 = vmov %v941_v4  ;;  %969 = vst.msk [vmem:[%s2160_s4] sm:$0xff] (%p2024_p0), %vm968_vm2, %v945_v54 }
 0x3d5   : > { %v868_v18 = vpop.xlane.xlu0 %867  ;;  %971 = vst.msk [vmem:[%s2160_s4] sm:$0xff] (%p2024_p0), %vm970_vm3, %v2179_v1 }
 0x3d6   : > { %1333 = vrcp.f32 %v929_v7  ;;  %v2008_v23 = vsel %vm1926_vm12, %v868_v18, %v1435_v23   ;;  %v847_v11 = vpop.xlane.xlu1 %846  ;;  %v2196_v7 = vmov %v2180_v42  ;;  %v2197_v18 = vmov %v942_v35 }
 0x3d7   : > { %v2183_v37 = vmov %v2008_v23  ;;  %v947_v62 = vsel %vm1926_vm12, %v847_v11, %v1455_v19   ;;  %1335 = vrcp.f32 %v1423_v24  ;;  %v2185_v24 = vmov %v939_v2 }
 0x3d8   : > { %v2190_v11 = vmov %v2181_v30  ;;  %v2192_v19 = vmov %v947_v62  ;;  %v2203_v2 = vmov %v2171_v56  ;;  %973 = vst.msk [vmem:[%s2160_s4] sm:$0xff] (%p2024_p0), %vm972_vm4, %v947_v62 }
 0x3d9   :  { %975 = vst.msk [vmem:[%s2160_s4] sm:$0xff] (%p2024_p0), %vm974_vm5, %v2182_v26 }
 0x3da   : > { %v863_v20 = vpop.xlane.xlu1 %862  ;;  %977 = vst.msk [vmem:[%s2160_s4] sm:$0xff] (%p2024_p0), %vm976_vm6, %v2181_v30 }
 0x3db   : > { %v951_v45 = vsel %vm1926_vm12, %v863_v20, %v1439_v17   ;;  %v2191_v20 = vmov %v2182_v26  ;;  %979 = vst.msk [vmem:[%s2160_s4] sm:$0xff] (%p2024_p0), %vm978_vm7, %v2178_v44 }
 0x3dc   : > { %v2188_v17 = vmov %v951_v45  ;;  %981 = vst.msk [vmem:[%s2160_s4] sm:$0xff] (%p2024_p0), %vm980_vm8, %v951_v45 }
 0x3dd   :  { %983 = vst.msk [vmem:[%s2160_s4] sm:$0xff] (%p2024_p0), %vm982_vm9, %v2183_v37 }
 0x3de   :  { %985 = vst.msk [vmem:[%s2160_s4] sm:$0xff] (%p2024_p0), %vm984_vm10, %v2177_v63 }
 0x3df   :  { %987 = vst.msk [vmem:[%s2160_s4] sm:$0xff] (%p2024_p0), %vm986_vm11, %v2204_v53 }
 0x3e0   : > { %v1334_v14 = vpop.eup %1333 }
 0x3e1   : > { %v931_v29 = vmul.f32 %v1427_v25, %v1334_v14  ;;  %v1336_v9 = vpop.eup %1335  ;;  %v2194_v14 = vmov %v945_v54 }
 0x3e3   : > { %v932_v47 = vsel %vm1926_vm12, %v931_v29, %v1427_v25  ;;  %v2202_v29 = vmov %v2172_v33 }
 0x3e4   : > { %v933_v23 = vmax.f32 %v932_v47, 1e-05  ;;  %382 = sbr.rel (!%p2024_p0) target bundleno = 415 (0x19f), region = 53 }
 0x3e6   : > { %v934_v34 = vmin.f32 %v933_v23, 1e+16  ;;  %v2187_v23 = vmov %v2183_v37 }
 0x3e8   : > { %v936_v50 = vmul.f32 %v1336_v9, %v934_v34 }
 0x3ea   : > { %v937_v25 = vsel %vm1926_vm12, %v934_v34, %v936_v50  }

</bundles_post_ra>
